<compile_context>
chip_gen: v7x
topology: tpu7x:2x2x1
jax: 0.10.0
libtpu: 0.0.40
codegen_flags: <defaults>
</compile_context>

<pallas_src>
import math

import jax
import jax.numpy as jnp
import numpy as np
from jax import lax
from jax.experimental import pallas as pl
from jax.experimental.pallas import tpu as pltpu


def _round_up(x, m):
    return (x + m - 1) // m * m


# ----------------------------------------------------------------------------
# Pallas kernel
# ----------------------------------------------------------------------------
def _make_kernel(T, E, N, rate, llr_clip):
    abs_lo = -math.log(math.tanh(llr_clip / 2.0))   # lower clamp for |lam|
    atanh_eps = 1e-6
    inv_log10 = 1.0 / math.log(10.0)
    E_pad = _round_up(E, 8)                         # sublane-aligned split point

    def kernel(chn_ref, av_hbm, ac_hbm, gvp_ref, gvpt_ref,
               w1_ref, b1_ref, w2_ref, b2_ref,
               out_ref, soft_sc, params_sc, s_sc, ac_sc, dma_sem):
        tau = pl.program_id(1)            # RRD round (serial / "arbitrary")
        f32 = jnp.float32
        bb = chn_ref.shape[1]             # lane-dense batch block

        # ---- per-batch-block init (tau == 0) --------------------------------
        @pl.when(tau == 0)
        def _init():
            # One-time DMA of the grid-invariant {0,1} operators straight into
            # single-buffered f32 VMEM scratch (overlapped with the adapter NN).
            cp_av = pltpu.make_async_copy(av_hbm, s_sc.at[pl.ds(0, E), :],
                                          dma_sem.at[0])
            cp_ac = pltpu.make_async_copy(ac_hbm, ac_sc, dma_sem.at[1])
            cp_av.start()
            cp_ac.start()
            if E_pad > E:
                # zero the alignment pad rows of the stacked operator
                s_sc[E:E_pad, :] = jnp.zeros((E_pad - E, E), f32)

            # SNR estimate + TwoLayerNet(1, 20, 4) in (feature, batch) layout
            chn0 = chn_ref[...]                                        # (N, bb)
            e_stat = jnp.mean(chn0 * chn0, axis=0, keepdims=True)      # (1, bb)
            snr_hat = (10.0 * inv_log10) * jnp.log(
                e_stat / (1.0 + jnp.sqrt(1.0 + e_stat)) / (4.0 * rate))
            h = jnp.maximum(w1_ref[...] * snr_hat + b1_ref[...], 0.0)  # (Hh,bb)
            logits = jnp.dot(w2_ref[...], h,
                             preferred_element_type=f32) + b2_ref[...]
            params_sc[...] = 1.0 / (1.0 + jnp.exp(-logits))            # (4, bb)
            soft_sc[...] = chn0

            cp_av.wait()
            cp_ac.wait()

        # ---- per-tau scalar rows, hoisted out of the T loop ----------------
        beta = params_sc[0:1, :]
        gamma = params_sc[1:2, :]
        wi = 1.5 * params_sc[2:3, :]
        we = 1.5 * params_sc[3:4, :]
        one_m_beta = 1.0 - beta
        one_m_gamma = 1.0 - gamma

        # refresh the per-round (Gv @ P[tau])^T rows of the stacked operator
        s_sc[E_pad:, :] = gvpt_ref[...]                                # (N, E)

        chn = chn_ref[...]
        # automorphism folded into GvP / (GvP)^T -> everything stays in the
        # un-permuted variable order
        ell_w = wi * (one_m_beta * chn + beta * soft_sc[...])          # (N, bb)
        llr_int = jnp.dot(gvp_ref[...], ell_w,
                          preferred_element_type=f32)                  # (E, bb)

        s_op = s_sc[...]        # (E_pad+N, E)  [A_v ; pad ; (Gv P)^T]
        a_c = ac_sc[...]        # (E, E)

        def h_step_raw(v2c):
            # fused check-side matmul: parity count + log-tanh sum share A_c
            neg = (v2c < 0).astype(f32)
            abs_l = jnp.clip(jnp.abs(v2c), abs_lo, llr_clip)
            lt = jnp.log(jnp.tanh(0.5 * abs_l))
            rhs = jnp.concatenate([neg, lt], axis=1)                   # (E,2bb)
            r = jnp.dot(a_c, rhs, preferred_element_type=f32)          # (E,2bb)
            k = r[:, :bb]                    # leave-one-out negative counts
            amp = r[:, bb:]                  # leave-one-out log-tanh sums
            parity = jnp.bitwise_and(k.astype(jnp.int32), 1).astype(f32)
            sgn = 1.0 - 2.0 * parity                                   # (-1)^k
            x = jnp.exp(amp) * (1.0 - atanh_eps)
            # exact 2*atanh(x) = log(1+x) - log(1-x)  (same EUP op count)
            return sgn * (jnp.log(1.0 + x) - jnp.log(1.0 - x))

        def var_update(c2v):
            # single fused matmul over [A_v ; (GvP)^T]
            r = jnp.dot(s_op, we * c2v, preferred_element_type=f32)    # (E_pad+N,bb)
            llr_ext = r[0:E, :]              # col_sum_loo -> next V step
            marg = ell_w + r[E_pad:, :]      # marginal (already un-permuted)
            return llr_ext, marg

        # ---- t = 0 peeled: both messages start at zero ----------------------
        v2c = gamma * llr_int
        c2v = gamma * h_step_raw(v2c)
        llr_ext, marg = var_update(c2v)
        out_ref[0, 0, :, :] = marg

        # ---- t = 1 .. T-1 ----------------------------------------------------
        if T <= 4:
            for t in range(1, T):            # small T (module default T=2)
                v2c = one_m_gamma * v2c + gamma * (llr_int + llr_ext)
                c2v = one_m_gamma * c2v + gamma * h_step_raw(v2c)
                llr_ext, marg = var_update(c2v)
                out_ref[0, t, :, :] = marg
            soft_sc[...] = marg
        else:
            def body(t, carry):
                v2c, c2v, llr_ext = carry
                v2c = one_m_gamma * v2c + gamma * (llr_int + llr_ext)
                c2v = one_m_gamma * c2v + gamma * h_step_raw(v2c)
                llr_ext, marg = var_update(c2v)
                out_ref[0, t, :, :] = marg
                return (v2c, c2v, llr_ext)
            lax.fori_loop(1, T, body, (v2c, c2v, llr_ext), unroll=2)
            soft_sc[...] = out_ref[0, T - 1, :, :]

    return kernel, E_pad


# ----------------------------------------------------------------------------
# Wrapper
# ----------------------------------------------------------------------------
def adarrd_forward(chn_llr, Gv, Gc, P_stack, W1, b1, W2, b2,
                   *, T_rrd, T, rate, llr_clip, batch_block=128):
    N, B = chn_llr.shape
    E = Gv.shape[0]
    Hh = W1.shape[0]
    f32 = jnp.float32

    bb = min(B, batch_block)
    assert B % bb == 0, "batch must be a multiple of the batch block"
    nb = B // bb

    # Host-side precomputation of the graph operators (all entries are {0,1}).
    eye = jnp.eye(E, dtype=f32)
    A_v = (Gv @ Gv.T - eye).astype(f32)                          # (E, E)
    A_c = (Gc @ Gc.T - eye).astype(f32)                          # (E, E)
    # Fold the per-round permutation into the edge<->variable incidence.
    GvP = jnp.einsum("en,tnm->tem", Gv, P_stack).astype(f32)     # (T_rrd, E, N)
    GvPT = jnp.transpose(GvP, (0, 2, 1))                         # (T_rrd, N, E)

    kernel, E_pad = _make_kernel(T, E, N, rate, llr_clip)

    # VMEM budget (scratch + pipelined buffers + temporaries) with headroom,
    # capped at 64 MiB so the limit is valid on v7x as well.
    est_bytes = 4 * ((E_pad + N) * E + E * E            # S / A_c scratch
                     + N * bb + 4 * bb                  # soft / params scratch
                     + 2 * N * bb                       # chn (double-buffered)
                     + 4 * E * N                        # GvP + GvPT (dbl-buf)
                     + 2 * T * N * bb                   # out (double-buffered)
                     + 14 * E * bb)                     # message temporaries
    vmem_limit = int(min(max(2 * est_bytes, 32 << 20), 64 << 20))

    cost = pl.CostEstimate(
        flops=int(nb * T_rrd * (2 * E * N * bb
                                + T * (4 * E * E * bb
                                       + 2 * (E_pad + N) * E * bb))),
        transcendentals=int(nb * T_rrd * T * 5 * E * bb),
        bytes_accessed=int(4 * (2 * E * E + 2 * T_rrd * E * N
                                + N * B + T_rrd * T * N * B)),
    )

    return pl.pallas_call(
        kernel,
        out_shape=jax.ShapeDtypeStruct((T_rrd, T, N, B), f32),
        grid_spec=pltpu.PrefetchScalarGridSpec(
            num_scalar_prefetch=0,
            grid=(nb, T_rrd),                    # batch blocks outer, RRD inner
            in_specs=[
                pl.BlockSpec((N, bb), lambda b, tau: (0, b)),           # chn_llr
                pl.BlockSpec(memory_space=pl.ANY),                      # A_v (HBM)
                pl.BlockSpec(memory_space=pl.ANY),                      # A_c (HBM)
                pl.BlockSpec((None, E, N), lambda b, tau: (tau, 0, 0)), # Gv@P[tau]
                pl.BlockSpec((None, N, E), lambda b, tau: (tau, 0, 0)), # (Gv@P)^T
                pl.BlockSpec((Hh, 1), lambda b, tau: (0, 0)),           # W1
                pl.BlockSpec((Hh, 1), lambda b, tau: (0, 0)),           # b1
                pl.BlockSpec((4, Hh), lambda b, tau: (0, 0)),           # W2
                pl.BlockSpec((4, 1), lambda b, tau: (0, 0)),            # b2
            ],
            out_specs=pl.BlockSpec((1, T, N, bb),
                                   lambda b, tau: (tau, 0, 0, b)),
            scratch_shapes=[
                pltpu.VMEM((N, bb), f32),            # carried soft output
                pltpu.VMEM((4, bb), f32),            # beta, gamma, Wi, We
                pltpu.VMEM((E_pad + N, E), f32),     # S = [A_v ; (GvP)^T]
                pltpu.VMEM((E, E), f32),             # A_c
                pltpu.SemaphoreType.DMA((2,)),       # A_v / A_c one-shot DMAs
            ],
        ),
        compiler_params=pltpu.CompilerParams(
            # batch axis may be sharded across TensorCores; the RRD axis
            # carries VMEM state and must stay serial ("arbitrary").
            dimension_semantics=("parallel", "arbitrary"),
            vmem_limit_bytes=vmem_limit),
        cost_estimate=cost,
    )(chn_llr, A_v, A_c, GvP, GvPT, W1, b1, W2, b2)


# ----------------------------------------------------------------------------
# Pure-JAX reference (mirrors the PyTorch forward exactly)
# ----------------------------------------------------------------------------
def reference_forward(chn_llr, Gv, Gc, P_stack, W1, b1, W2, b2,
                      *, T_rrd, T, rate, llr_clip):
    abs_lo = -math.log(math.tanh(llr_clip / 2.0))
    eps = 1e-6
    e_stat = jnp.mean(chn_llr ** 2, axis=0, keepdims=True)
    snr = 10.0 * jnp.log10(e_stat / (1.0 + jnp.sqrt(1.0 + e_stat)) / (4.0 * rate))
    h = jnp.maximum(W1 * snr + b1, 0.0)
    p = jax.nn.sigmoid(W2 @ h + b2)
    beta, gamma, wi, we = p[0:1], p[1:2], 1.5 * p[2:3], 1.5 * p[3:4]
    N, B = chn_llr.shape
    E = Gv.shape[0]
    soft_out = chn_llr
    outs = []
    for tau in range(T_rrd):
        P = P_stack[tau]
        soft_in = P @ ((1.0 - beta) * chn_llr + beta * soft_out)
        ell_w = wi * soft_in
        llr_int = Gv @ ell_w
        v2c = jnp.zeros((E, B), jnp.float32)
        c2v = jnp.zeros((E, B), jnp.float32)
        per_tau = []
        for t in range(T):
            lam_w = we * c2v
            v_new = llr_int + Gv @ (Gv.T @ lam_w) - lam_w
            v2c = (1.0 - gamma) * v2c + gamma * v_new
            lam = jnp.clip(v2c, -llr_clip, llr_clip)
            neg = (lam < 0).astype(jnp.float32)
            k = Gc @ (Gc.T @ neg) - neg
            sgn = 1.0 - 2.0 * jnp.mod(jnp.floor(k + 0.5), 2.0)
            abs_lam = jnp.clip(jnp.abs(lam), abs_lo, llr_clip)
            lt = jnp.log(jnp.tanh(0.5 * abs_lam))
            amp = Gc @ (Gc.T @ lt) - lt
            x = jnp.exp(amp) * (1.0 - eps)
            h_new = sgn * jnp.log((1.0 + x) / (1.0 - x))
            c2v = (1.0 - gamma) * c2v + gamma * h_new
            marg = ell_w + Gv.T @ (we * c2v)
            per_tau.append(P.T @ marg)
        soft_out = per_tau[-1]
        outs.append(jnp.stack(per_tau))
    return jnp.stack(outs)


def build_graph(Hmat):
    """Build {0,1} edge->variable / edge->check incidence matrices."""
    M, N = Hmat.shape
    rows, cols = np.nonzero(Hmat)
    E = rows.shape[0]
    Gv = np.zeros((E, N), np.float32)
    Gc = np.zeros((E, M), np.float32)
    Gv[np.arange(E), cols] = 1.0
    Gc[np.arange(E), rows] = 1.0
    return Gv, Gc


# ----------------------------------------------------------------------------
if __name__ == "__main__":
    key = jax.random.PRNGKey(0)

    # small synthetic code: N=16 variables, M=8 checks, E=32 edges, rate 0.5
    # batch B=128 so the TPU lane dimension is fully dense
    N, M, B = 16, 8, 128
    T_rrd, T = 4, 2
    llr_clip = 15.0
    rate = (N - M) / N

    Hmat = np.zeros((M, N), np.int32)
    for r in range(4):
        Hmat[r, 4 * r:4 * r + 4] = 1
    for r in range(4):
        Hmat[4 + r, [r, r + 4, r + 8, r + 12]] = 1
    Gv_np, Gc_np = build_graph(Hmat)
    Gv = jnp.asarray(Gv_np)
    Gc = jnp.asarray(Gc_np)

    # deterministic adapter (TwoLayerNet(1, 20, 4)) params, transposed layout
    k1, k2, k3, k4, k5, kperm = jax.random.split(key, 6)
    H_adapt = 20
    W1 = jax.random.normal(k1, (H_adapt, 1), jnp.float32) * 0.5   # linear1.weight
    b1 = jax.random.normal(k2, (H_adapt, 1), jnp.float32) * 0.1   # linear1.bias
    W2 = jax.random.normal(k3, (4, H_adapt), jnp.float32) * 0.3   # linear2.weight
    b2 = jax.random.normal(k4, (4, 1), jnp.float32) * 0.1         # linear2.bias

    chn_llr = jax.random.normal(k5, (N, B), jnp.float32) * 1.5

    # random "automorphisms" (row permutations) as one-hot matrices
    # TODO(synk): real code.random_automorphism() samples from the code's
    # automorphism group; here we use deterministic random permutations.
    perms = [jax.random.permutation(jax.random.fold_in(kperm, tau), N)
             for tau in range(T_rrd)]
    P_stack = jnp.stack([jax.nn.one_hot(p, N, dtype=jnp.float32) for p in perms])

    out = adarrd_forward(chn_llr, Gv, Gc, P_stack, W1, b1, W2, b2,
                         T_rrd=T_rrd, T=T, rate=rate, llr_clip=llr_clip)
    out = jax.block_until_ready(out)

    ref = reference_forward(chn_llr, Gv, Gc, P_stack, W1, b1, W2, b2,
                            T_rrd=T_rrd, T=T, rate=rate, llr_clip=llr_clip)
    ref = jax.block_until_ready(ref)

    assert np.isfinite(np.asarray(out)).all(), "non-finite kernel output"
    max_err = float(jnp.max(jnp.abs(out - ref)))
    assert max_err < 3e-2, f"kernel vs reference mismatch: max abs err {max_err}"

    print("KERNEL_OK")
</pallas_src>

<mosaic_0001>
module attributes {stable_mosaic.version = 11 : i64} {
  func.func @kernel(%arg0: i32, %arg1: i32, %arg2: memref<16x128xf32, #tpu.memory_space<vmem>>, %arg3: memref<32x32xf32, #tpu.memory_space<any>>, %arg4: memref<32x32xf32, #tpu.memory_space<any>>, %arg5: memref<1x32x16xf32, #tpu.memory_space<vmem>>, %arg6: memref<1x16x32xf32, #tpu.memory_space<vmem>>, %arg7: memref<20x1xf32, #tpu.memory_space<vmem>>, %arg8: memref<20x1xf32, #tpu.memory_space<vmem>>, %arg9: memref<4x20xf32, #tpu.memory_space<vmem>>, %arg10: memref<4x1xf32, #tpu.memory_space<vmem>>, %arg11: memref<1x2x16x128xf32, #tpu.memory_space<vmem>>, %arg12: memref<16x128xf32, #tpu.memory_space<vmem>>, %arg13: memref<4x128xf32, #tpu.memory_space<vmem>>, %arg14: memref<48x32xf32, #tpu.memory_space<vmem>>, %arg15: memref<32x32xf32, #tpu.memory_space<vmem>>, %arg16: memref<2x!tpu.dma_semaphore, #tpu.memory_space<semaphore_mem>>) attributes {dimension_semantics = [#tpu.dimension_semantics<parallel>, #tpu.dimension_semantics<arbitrary>], iteration_bounds = array<i64: 1, 4>, scalar_prefetch = 0 : i64, scratch_operands = 5 : i64, tpu.core_type = #tpu.core_type<tc>, window_params = [{transform_indices = @transform_0, window_bounds = array<i64: 16, 128>}, {}, {}, {transform_indices = @transform_3, window_bounds = array<i64: 1, 32, 16>}, {transform_indices = @transform_4, window_bounds = array<i64: 1, 16, 32>}, {pipeline_mode = #tpu.pipeline_mode<synchronous>, transform_indices = @transform_5, window_bounds = array<i64: 20, 1>}, {pipeline_mode = #tpu.pipeline_mode<synchronous>, transform_indices = @transform_6, window_bounds = array<i64: 20, 1>}, {pipeline_mode = #tpu.pipeline_mode<synchronous>, transform_indices = @transform_7, window_bounds = array<i64: 4, 20>}, {pipeline_mode = #tpu.pipeline_mode<synchronous>, transform_indices = @transform_8, window_bounds = array<i64: 4, 1>}, {transform_indices = @transform_9, window_bounds = array<i64: 1, 2, 16, 128>}]} {
    %c0_i32 = arith.constant 0 : i32
    %0 = arith.cmpi eq, %arg1, %c0_i32 : i32
    %1 = arith.extui %0 : i1 to i32
    %c0_i32_0 = arith.constant 0 : i32
    %2 = arith.cmpi ne, %1, %c0_i32_0 : i32
    scf.if %2 {
      %c0_i32_57 = arith.constant 0 : i32
      %c0_i32_58 = arith.constant 0 : i32
      %c0_i32_59 = arith.constant 0 : i32
      %137 = tpu.memref_slice %arg14[%c0_i32_58, %c0_i32_59] : memref<48x32xf32, #tpu.memory_space<vmem>> -> memref<32x32xf32, #tpu.memory_space<vmem>>
      %138 = tpu.memref_slice %arg16[%c0_i32_57] : memref<2x!tpu.dma_semaphore, #tpu.memory_space<semaphore_mem>> -> memref<1x!tpu.dma_semaphore, #tpu.memory_space<semaphore_mem>>
      %139 = tpu.memref_squeeze %138 : memref<1x!tpu.dma_semaphore, #tpu.memory_space<semaphore_mem>> -> memref<!tpu.dma_semaphore, #tpu.memory_space<semaphore_mem>>
      tpu.enqueue_dma source(%arg3 : memref<32x32xf32, #tpu.memory_space<any>>) target(%137 : memref<32x32xf32, #tpu.memory_space<vmem>>) target_semaphore(%139 : memref<!tpu.dma_semaphore, #tpu.memory_space<semaphore_mem>>)
      %c1_i32_60 = arith.constant 1 : i32
      %140 = tpu.memref_slice %arg16[%c1_i32_60] : memref<2x!tpu.dma_semaphore, #tpu.memory_space<semaphore_mem>> -> memref<1x!tpu.dma_semaphore, #tpu.memory_space<semaphore_mem>>
      %141 = tpu.memref_squeeze %140 : memref<1x!tpu.dma_semaphore, #tpu.memory_space<semaphore_mem>> -> memref<!tpu.dma_semaphore, #tpu.memory_space<semaphore_mem>>
      tpu.enqueue_dma source(%arg4 : memref<32x32xf32, #tpu.memory_space<any>>) target(%arg15 : memref<32x32xf32, #tpu.memory_space<vmem>>) target_semaphore(%141 : memref<!tpu.dma_semaphore, #tpu.memory_space<semaphore_mem>>)
      %c0_61 = arith.constant 0 : index
      %c0_62 = arith.constant 0 : index
      %142 = vector.load %arg2[%c0_61, %c0_62] : memref<16x128xf32, #tpu.memory_space<vmem>>, vector<16x128xf32>
      %143 = arith.mulf %142, %142 : vector<16x128xf32>
      %cst_63 = arith.constant dense<0.000000e+00> : vector<128xf32>
      %144 = vector.multi_reduction <add>, %143, %cst_63 [0] : vector<16x128xf32> to vector<128xf32>
      %145 = vector.shape_cast %144 : vector<128xf32> to vector<1x128xf32>
      %cst_64 = arith.constant 1.600000e+01 : f32
      %146 = vector.broadcast %cst_64 : f32 to vector<1x128xf32>
      %147 = arith.divf %145, %146 : vector<1x128xf32>
      %cst_65 = arith.constant 1.000000e+00 : f32
      %148 = vector.broadcast %cst_65 : f32 to vector<1x128xf32>
      %149 = arith.addf %148, %147 : vector<1x128xf32>
      %150 = math.sqrt %149 : vector<1x128xf32>
      %cst_66 = arith.constant 1.000000e+00 : f32
      %151 = vector.broadcast %cst_66 : f32 to vector<1x128xf32>
      %152 = arith.addf %151, %150 : vector<1x128xf32>
      %153 = arith.divf %147, %152 : vector<1x128xf32>
      %cst_67 = arith.constant 2.000000e+00 : f32
      %154 = vector.broadcast %cst_67 : f32 to vector<1x128xf32>
      %155 = arith.divf %153, %154 : vector<1x128xf32>
      %156 = math.log %155 : vector<1x128xf32>
      %cst_68 = arith.constant 4.34294462 : f32
      %157 = vector.broadcast %cst_68 : f32 to vector<1x128xf32>
      %158 = arith.mulf %157, %156 : vector<1x128xf32>
      %c0_69 = arith.constant 0 : index
      %c0_70 = arith.constant 0 : index
      %159 = vector.load %arg7[%c0_69, %c0_70] : memref<20x1xf32, #tpu.memory_space<vmem>>, vector<20x1xf32>
      %160 = vector.broadcast %159 : vector<20x1xf32> to vector<20x128xf32>
      %161 = vector.broadcast %158 : vector<1x128xf32> to vector<20x128xf32>
      %162 = arith.mulf %160, %161 : vector<20x128xf32>
      %c0_71 = arith.constant 0 : index
      %c0_72 = arith.constant 0 : index
      %163 = vector.load %arg8[%c0_71, %c0_72] : memref<20x1xf32, #tpu.memory_space<vmem>>, vector<20x1xf32>
      %164 = vector.broadcast %163 : vector<20x1xf32> to vector<20x128xf32>
      %165 = arith.addf %162, %164 : vector<20x128xf32>
      %cst_73 = arith.constant 0.000000e+00 : f32
      %166 = vector.broadcast %cst_73 : f32 to vector<20x128xf32>
      %167 = arith.maximumf %165, %166 : vector<20x128xf32>
      %c0_74 = arith.constant 0 : index
      %c0_75 = arith.constant 0 : index
      %168 = vector.load %arg9[%c0_74, %c0_75] : memref<4x20xf32, #tpu.memory_space<vmem>>, vector<4x20xf32>
      %cst_76 = arith.constant dense<0.000000e+00> : vector<4x128xf32>
      %169 = tpu.matmul %168, %167, %cst_76 {dimension_numbers = #tpu.dot_dimension_numbers<[1], [0], [0], [1], [0, 0, 1, 1], [], []>} : vector<4x20xf32>, vector<20x128xf32>, vector<4x128xf32> -> vector<4x128xf32>
      %c0_77 = arith.constant 0 : index
      %c0_78 = arith.constant 0 : index
      %170 = vector.load %arg10[%c0_77, %c0_78] : memref<4x1xf32, #tpu.memory_space<vmem>>, vector<4x1xf32>
      %171 = vector.broadcast %170 : vector<4x1xf32> to vector<4x128xf32>
      %172 = arith.addf %169, %171 : vector<4x128xf32>
      %cst_79 = arith.constant 0.000000e+00 : f32
      %173 = vector.broadcast %cst_79 : f32 to vector<4x128xf32>
      %174 = arith.subf %173, %172 : vector<4x128xf32>
      %175 = math.exp %174 : vector<4x128xf32>
      %cst_80 = arith.constant 1.000000e+00 : f32
      %176 = vector.broadcast %cst_80 : f32 to vector<4x128xf32>
      %177 = arith.addf %176, %175 : vector<4x128xf32>
      %cst_81 = arith.constant 1.000000e+00 : f32
      %178 = vector.broadcast %cst_81 : f32 to vector<4x128xf32>
      %179 = arith.divf %178, %177 : vector<4x128xf32>
      %c0_82 = arith.constant 0 : index
      %c0_83 = arith.constant 0 : index
      %180 = vector.load %arg13[%c0_82, %c0_83] : memref<4x128xf32, #tpu.memory_space<vmem>>, vector<4x128xf32>
      tpu.vector_store %arg13[%c0_82, %c0_83], %179 {strides = array<i32>} : memref<4x128xf32, #tpu.memory_space<vmem>>, vector<4x128xf32>,
      %c0_84 = arith.constant 0 : index
      %c0_85 = arith.constant 0 : index
      %181 = vector.load %arg12[%c0_84, %c0_85] : memref<16x128xf32, #tpu.memory_space<vmem>>, vector<16x128xf32>
      tpu.vector_store %arg12[%c0_84, %c0_85], %142 {strides = array<i32>} : memref<16x128xf32, #tpu.memory_space<vmem>>, vector<16x128xf32>,
      %c0_i32_86 = arith.constant 0 : i32
      %c0_i32_87 = arith.constant 0 : i32
      %c0_i32_88 = arith.constant 0 : i32
      %182 = tpu.memref_slice %arg14[%c0_i32_87, %c0_i32_88] : memref<48x32xf32, #tpu.memory_space<vmem>> -> memref<32x32xf32, #tpu.memory_space<vmem>>
      %183 = tpu.memref_slice %arg16[%c0_i32_86] : memref<2x!tpu.dma_semaphore, #tpu.memory_space<semaphore_mem>> -> memref<1x!tpu.dma_semaphore, #tpu.memory_space<semaphore_mem>>
      %184 = tpu.memref_squeeze %183 : memref<1x!tpu.dma_semaphore, #tpu.memory_space<semaphore_mem>> -> memref<!tpu.dma_semaphore, #tpu.memory_space<semaphore_mem>>
      tpu.wait_dma2 semaphore(%184 : memref<!tpu.dma_semaphore, #tpu.memory_space<semaphore_mem>>) src(%arg3 : memref<32x32xf32, #tpu.memory_space<any>>) dst(%182 : memref<32x32xf32, #tpu.memory_space<vmem>>)
      %c1_i32_89 = arith.constant 1 : i32
      %185 = tpu.memref_slice %arg16[%c1_i32_89] : memref<2x!tpu.dma_semaphore, #tpu.memory_space<semaphore_mem>> -> memref<1x!tpu.dma_semaphore, #tpu.memory_space<semaphore_mem>>
      %186 = tpu.memref_squeeze %185 : memref<1x!tpu.dma_semaphore, #tpu.memory_space<semaphore_mem>> -> memref<!tpu.dma_semaphore, #tpu.memory_space<semaphore_mem>>
      tpu.wait_dma2 semaphore(%186 : memref<!tpu.dma_semaphore, #tpu.memory_space<semaphore_mem>>) src(%arg4 : memref<32x32xf32, #tpu.memory_space<any>>) dst(%arg15 : memref<32x32xf32, #tpu.memory_space<vmem>>)
    } else {
    }
    %c0 = arith.constant 0 : index
    %c0_1 = arith.constant 0 : index
    %3 = vector.load %arg13[%c0, %c0_1] : memref<4x128xf32, #tpu.memory_space<vmem>>, vector<1x128xf32>
    %c1 = arith.constant 1 : index
    %c0_2 = arith.constant 0 : index
    %4 = vector.load %arg13[%c1, %c0_2] : memref<4x128xf32, #tpu.memory_space<vmem>>, vector<1x128xf32>
    %c2 = arith.constant 2 : index
    %c0_3 = arith.constant 0 : index
    %5 = vector.load %arg13[%c2, %c0_3] : memref<4x128xf32, #tpu.memory_space<vmem>>, vector<1x128xf32>
    %cst = arith.constant 1.500000e+00 : f32
    %6 = vector.broadcast %cst : f32 to vector<1x128xf32>
    %7 = arith.mulf %6, %5 : vector<1x128xf32>
    %c3 = arith.constant 3 : index
    %c0_4 = arith.constant 0 : index
    %8 = vector.load %arg13[%c3, %c0_4] : memref<4x128xf32, #tpu.memory_space<vmem>>, vector<1x128xf32>
    %cst_5 = arith.constant 1.500000e+00 : f32
    %9 = vector.broadcast %cst_5 : f32 to vector<1x128xf32>
    %10 = arith.mulf %9, %8 : vector<1x128xf32>
    %cst_6 = arith.constant 1.000000e+00 : f32
    %11 = vector.broadcast %cst_6 : f32 to vector<1x128xf32>
    %12 = arith.subf %11, %3 : vector<1x128xf32>
    %cst_7 = arith.constant 1.000000e+00 : f32
    %13 = vector.broadcast %cst_7 : f32 to vector<1x128xf32>
    %14 = arith.subf %13, %4 : vector<1x128xf32>
    %c0_8 = arith.constant 0 : index
    %c0_9 = arith.constant 0 : index
    %c0_10 = arith.constant 0 : index
    %15 = vector.load %arg6[%c0_8, %c0_9, %c0_10] : memref<1x16x32xf32, #tpu.memory_space<vmem>>, vector<1x16x32xf32>
    %16 = vector.shape_cast %15 : vector<1x16x32xf32> to vector<16x32xf32>
    %c32 = arith.constant 32 : index
    %c0_11 = arith.constant 0 : index
    %17 = vector.load %arg14[%c32, %c0_11] : memref<48x32xf32, #tpu.memory_space<vmem>>, vector<16x32xf32>
    tpu.vector_store %arg14[%c32, %c0_11], %16 {strides = array<i32>} : memref<48x32xf32, #tpu.memory_space<vmem>>, vector<16x32xf32>,
    %c0_12 = arith.constant 0 : index
    %c0_13 = arith.constant 0 : index
    %18 = vector.load %arg2[%c0_12, %c0_13] : memref<16x128xf32, #tpu.memory_space<vmem>>, vector<16x128xf32>
    %19 = vector.broadcast %12 : vector<1x128xf32> to vector<16x128xf32>
    %20 = arith.mulf %19, %18 : vector<16x128xf32>
    %c0_14 = arith.constant 0 : index
    %c0_15 = arith.constant 0 : index
    %21 = vector.load %arg12[%c0_14, %c0_15] : memref<16x128xf32, #tpu.memory_space<vmem>>, vector<16x128xf32>
    %22 = vector.broadcast %3 : vector<1x128xf32> to vector<16x128xf32>
    %23 = arith.mulf %22, %21 : vector<16x128xf32>
    %24 = arith.addf %20, %23 : vector<16x128xf32>
    %25 = vector.broadcast %7 : vector<1x128xf32> to vector<16x128xf32>
    %26 = arith.mulf %25, %24 : vector<16x128xf32>
    %c0_16 = arith.constant 0 : index
    %c0_17 = arith.constant 0 : index
    %c0_18 = arith.constant 0 : index
    %27 = vector.load %arg5[%c0_16, %c0_17, %c0_18] : memref<1x32x16xf32, #tpu.memory_space<vmem>>, vector<1x32x16xf32>
    %28 = vector.shape_cast %27 : vector<1x32x16xf32> to vector<32x16xf32>
    %cst_19 = arith.constant dense<0.000000e+00> : vector<32x128xf32>
    %29 = tpu.matmul %28, %26, %cst_19 {dimension_numbers = #tpu.dot_dimension_numbers<[1], [0], [0], [1], [0, 0, 1, 1], [], []>} : vector<32x16xf32>, vector<16x128xf32>, vector<32x128xf32> -> vector<32x128xf32>
    %c0_20 = arith.constant 0 : index
    %c0_21 = arith.constant 0 : index
    %30 = vector.load %arg14[%c0_20, %c0_21] : memref<48x32xf32, #tpu.memory_space<vmem>>, vector<48x32xf32>
    %c0_22 = arith.constant 0 : index
    %c0_23 = arith.constant 0 : index
    %31 = vector.load %arg15[%c0_22, %c0_23] : memref<32x32xf32, #tpu.memory_space<vmem>>, vector<32x32xf32>
    %32 = vector.broadcast %4 : vector<1x128xf32> to vector<32x128xf32>
    %33 = arith.mulf %32, %29 : vector<32x128xf32>
    %cst_24 = arith.constant 0.000000e+00 : f32
    %34 = vector.broadcast %cst_24 : f32 to vector<32x128xf32>
    %35 = arith.cmpf olt, %33, %34 : vector<32x128xf32>
    %36 = arith.extui %35 : vector<32x128xi1> to vector<32x128xi32>
    %37 = arith.sitofp %36 : vector<32x128xi32> to vector<32x128xf32>
    %38 = math.absf %33 : vector<32x128xf32>
    %cst_25 = arith.constant 6.11804637E-7 : f32
    %cst_26 = arith.constant 1.500000e+01 : f32
    %39 = vector.broadcast %cst_25 : f32 to vector<32x128xf32>
    %40 = arith.maximumf %39, %38 : vector<32x128xf32>
    %41 = vector.broadcast %cst_26 : f32 to vector<32x128xf32>
    %42 = arith.minimumf %41, %40 : vector<32x128xf32>
    %cst_27 = arith.constant 5.000000e-01 : f32
    %43 = vector.broadcast %cst_27 : f32 to vector<32x128xf32>
    %44 = arith.mulf %43, %42 : vector<32x128xf32>
    %45 = math.tanh %44 : vector<32x128xf32>
    %46 = math.log %45 : vector<32x128xf32>
    %47 = tpu.concatenate %37, %46 in 1 : vector<32x128xf32>, vector<32x128xf32> -> vector<32x256xf32>
    %cst_28 = arith.constant dense<0.000000e+00> : vector<32x256xf32>
    %48 = tpu.matmul %31, %47, %cst_28 {dimension_numbers = #tpu.dot_dimension_numbers<[1], [0], [0], [1], [0, 0, 1, 1], [], []>} : vector<32x32xf32>, vector<32x256xf32>, vector<32x256xf32> -> vector<32x256xf32>
    %49 = vector.extract_strided_slice %48 {offsets = [0, 0], sizes = [32, 128], strides = [1, 1]} : vector<32x256xf32> to vector<32x128xf32>
    %50 = vector.extract_strided_slice %48 {offsets = [0, 128], sizes = [32, 128], strides = [1, 1]} : vector<32x256xf32> to vector<32x128xf32>
    %51 = arith.fptosi %49 : vector<32x128xf32> to vector<32x128xi32>
    %c1_i32 = arith.constant 1 : i32
    %52 = vector.broadcast %c1_i32 : i32 to vector<32x128xi32>
    %53 = arith.andi %51, %52 : vector<32x128xi32>
    %54 = arith.sitofp %53 : vector<32x128xi32> to vector<32x128xf32>
    %cst_29 = arith.constant 2.000000e+00 : f32
    %55 = vector.broadcast %cst_29 : f32 to vector<32x128xf32>
    %56 = arith.mulf %55, %54 : vector<32x128xf32>
    %cst_30 = arith.constant 1.000000e+00 : f32
    %57 = vector.broadcast %cst_30 : f32 to vector<32x128xf32>
    %58 = arith.subf %57, %56 : vector<32x128xf32>
    %59 = math.exp %50 : vector<32x128xf32>
    %cst_31 = arith.constant 0.999998986 : f32
    %60 = vector.broadcast %cst_31 : f32 to vector<32x128xf32>
    %61 = arith.mulf %59, %60 : vector<32x128xf32>
    %cst_32 = arith.constant 1.000000e+00 : f32
    %62 = vector.broadcast %cst_32 : f32 to vector<32x128xf32>
    %63 = arith.addf %62, %61 : vector<32x128xf32>
    %64 = math.log %63 : vector<32x128xf32>
    %cst_33 = arith.constant 1.000000e+00 : f32
    %65 = vector.broadcast %cst_33 : f32 to vector<32x128xf32>
    %66 = arith.subf %65, %61 : vector<32x128xf32>
    %67 = math.log %66 : vector<32x128xf32>
    %68 = arith.subf %64, %67 : vector<32x128xf32>
    %69 = arith.mulf %58, %68 : vector<32x128xf32>
    %70 = vector.broadcast %4 : vector<1x128xf32> to vector<32x128xf32>
    %71 = arith.mulf %70, %69 : vector<32x128xf32>
    %72 = vector.broadcast %10 : vector<1x128xf32> to vector<32x128xf32>
    %73 = arith.mulf %72, %71 : vector<32x128xf32>
    %cst_34 = arith.constant dense<0.000000e+00> : vector<48x128xf32>
    %74 = tpu.matmul %30, %73, %cst_34 {dimension_numbers = #tpu.dot_dimension_numbers<[1], [0], [0], [1], [0, 0, 1, 1], [], []>} : vector<48x32xf32>, vector<32x128xf32>, vector<48x128xf32> -> vector<48x128xf32>
    %75 = vector.extract_strided_slice %74 {offsets = [0, 0], sizes = [32, 128], strides = [1, 1]} : vector<48x128xf32> to vector<32x128xf32>
    %76 = vector.extract_strided_slice %74 {offsets = [32, 0], sizes = [16, 128], strides = [1, 1]} : vector<48x128xf32> to vector<16x128xf32>
    %77 = arith.addf %26, %76 : vector<16x128xf32>
    %c0_35 = arith.constant 0 : index
    %c0_36 = arith.constant 0 : index
    %c0_37 = arith.constant 0 : index
    %c0_38 = arith.constant 0 : index
    %78 = vector.load %arg11[%c0_35, %c0_36, %c0_37, %c0_38] : memref<1x2x16x128xf32, #tpu.memory_space<vmem>>, vector<1x1x16x128xf32>
    %79 = vector.shape_cast %78 : vector<1x1x16x128xf32> to vector<16x128xf32>
    %80 = vector.shape_cast %77 : vector<16x128xf32> to vector<1x1x16x128xf32>
    tpu.vector_store %arg11[%c0_35, %c0_36, %c0_37, %c0_38], %80 {strides = array<i32>} : memref<1x2x16x128xf32, #tpu.memory_space<vmem>>, vector<1x1x16x128xf32>,
    %81 = vector.broadcast %14 : vector<1x128xf32> to vector<32x128xf32>
    %82 = arith.mulf %81, %33 : vector<32x128xf32>
    %83 = arith.addf %29, %75 : vector<32x128xf32>
    %84 = vector.broadcast %4 : vector<1x128xf32> to vector<32x128xf32>
    %85 = arith.mulf %84, %83 : vector<32x128xf32>
    %86 = arith.addf %82, %85 : vector<32x128xf32>
    %87 = vector.broadcast %14 : vector<1x128xf32> to vector<32x128xf32>
    %88 = arith.mulf %87, %71 : vector<32x128xf32>
    %cst_39 = arith.constant 0.000000e+00 : f32
    %89 = vector.broadcast %cst_39 : f32 to vector<32x128xf32>
    %90 = arith.cmpf olt, %86, %89 : vector<32x128xf32>
    %91 = arith.extui %90 : vector<32x128xi1> to vector<32x128xi32>
    %92 = arith.sitofp %91 : vector<32x128xi32> to vector<32x128xf32>
    %93 = math.absf %86 : vector<32x128xf32>
    %cst_40 = arith.constant 6.11804637E-7 : f32
    %cst_41 = arith.constant 1.500000e+01 : f32
    %94 = vector.broadcast %cst_40 : f32 to vector<32x128xf32>
    %95 = arith.maximumf %94, %93 : vector<32x128xf32>
    %96 = vector.broadcast %cst_41 : f32 to vector<32x128xf32>
    %97 = arith.minimumf %96, %95 : vector<32x128xf32>
    %cst_42 = arith.constant 5.000000e-01 : f32
    %98 = vector.broadcast %cst_42 : f32 to vector<32x128xf32>
    %99 = arith.mulf %98, %97 : vector<32x128xf32>
    %100 = math.tanh %99 : vector<32x128xf32>
    %101 = math.log %100 : vector<32x128xf32>
    %102 = tpu.concatenate %92, %101 in 1 : vector<32x128xf32>, vector<32x128xf32> -> vector<32x256xf32>
    %cst_43 = arith.constant dense<0.000000e+00> : vector<32x256xf32>
    %103 = tpu.matmul %31, %102, %cst_43 {dimension_numbers = #tpu.dot_dimension_numbers<[1], [0], [0], [1], [0, 0, 1, 1], [], []>} : vector<32x32xf32>, vector<32x256xf32>, vector<32x256xf32> -> vector<32x256xf32>
    %104 = vector.extract_strided_slice %103 {offsets = [0, 0], sizes = [32, 128], strides = [1, 1]} : vector<32x256xf32> to vector<32x128xf32>
    %105 = vector.extract_strided_slice %103 {offsets = [0, 128], sizes = [32, 128], strides = [1, 1]} : vector<32x256xf32> to vector<32x128xf32>
    %106 = arith.fptosi %104 : vector<32x128xf32> to vector<32x128xi32>
    %c1_i32_44 = arith.constant 1 : i32
    %107 = vector.broadcast %c1_i32_44 : i32 to vector<32x128xi32>
    %108 = arith.andi %106, %107 : vector<32x128xi32>
    %109 = arith.sitofp %108 : vector<32x128xi32> to vector<32x128xf32>
    %cst_45 = arith.constant 2.000000e+00 : f32
    %110 = vector.broadcast %cst_45 : f32 to vector<32x128xf32>
    %111 = arith.mulf %110, %109 : vector<32x128xf32>
    %cst_46 = arith.constant 1.000000e+00 : f32
    %112 = vector.broadcast %cst_46 : f32 to vector<32x128xf32>
    %113 = arith.subf %112, %111 : vector<32x128xf32>
    %114 = math.exp %105 : vector<32x128xf32>
    %cst_47 = arith.constant 0.999998986 : f32
    %115 = vector.broadcast %cst_47 : f32 to vector<32x128xf32>
    %116 = arith.mulf %114, %115 : vector<32x128xf32>
    %cst_48 = arith.constant 1.000000e+00 : f32
    %117 = vector.broadcast %cst_48 : f32 to vector<32x128xf32>
    %118 = arith.addf %117, %116 : vector<32x128xf32>
    %119 = math.log %118 : vector<32x128xf32>
    %cst_49 = arith.constant 1.000000e+00 : f32
    %120 = vector.broadcast %cst_49 : f32 to vector<32x128xf32>
    %121 = arith.subf %120, %116 : vector<32x128xf32>
    %122 = math.log %121 : vector<32x128xf32>
    %123 = arith.subf %119, %122 : vector<32x128xf32>
    %124 = arith.mulf %113, %123 : vector<32x128xf32>
    %125 = vector.broadcast %4 : vector<1x128xf32> to vector<32x128xf32>
    %126 = arith.mulf %125, %124 : vector<32x128xf32>
    %127 = arith.addf %88, %126 : vector<32x128xf32>
    %128 = vector.broadcast %10 : vector<1x128xf32> to vector<32x128xf32>
    %129 = arith.mulf %128, %127 : vector<32x128xf32>
    %cst_50 = arith.constant dense<0.000000e+00> : vector<48x128xf32>
    %130 = tpu.matmul %30, %129, %cst_50 {dimension_numbers = #tpu.dot_dimension_numbers<[1], [0], [0], [1], [0, 0, 1, 1], [], []>} : vector<48x32xf32>, vector<32x128xf32>, vector<48x128xf32> -> vector<48x128xf32>
    %131 = vector.extract_strided_slice %130 {offsets = [32, 0], sizes = [16, 128], strides = [1, 1]} : vector<48x128xf32> to vector<16x128xf32>
    %132 = arith.addf %26, %131 : vector<16x128xf32>
    %c0_51 = arith.constant 0 : index
    %c1_52 = arith.constant 1 : index
    %c0_53 = arith.constant 0 : index
    %c0_54 = arith.constant 0 : index
    %133 = vector.load %arg11[%c0_51, %c1_52, %c0_53, %c0_54] : memref<1x2x16x128xf32, #tpu.memory_space<vmem>>, vector<1x1x16x128xf32>
    %134 = vector.shape_cast %133 : vector<1x1x16x128xf32> to vector<16x128xf32>
    %135 = vector.shape_cast %132 : vector<16x128xf32> to vector<1x1x16x128xf32>
    tpu.vector_store %arg11[%c0_51, %c1_52, %c0_53, %c0_54], %135 {strides = array<i32>} : memref<1x2x16x128xf32, #tpu.memory_space<vmem>>, vector<1x1x16x128xf32>,
    %c0_55 = arith.constant 0 : index
    %c0_56 = arith.constant 0 : index
    %136 = vector.load %arg12[%c0_55, %c0_56] : memref<16x128xf32, #tpu.memory_space<vmem>>, vector<16x128xf32>
    tpu.vector_store %arg12[%c0_55, %c0_56], %132 {strides = array<i32>} : memref<16x128xf32, #tpu.memory_space<vmem>>, vector<16x128xf32>,
    return
  }
  func.func @transform_0(%arg0: i32, %arg1: i32) -> (i32, i32) {
    %c0_i32 = arith.constant 0 : i32
    %c0_i32_0 = arith.constant 0 : i32
    return %c0_i32, %arg0 : i32, i32
  }
  func.func @transform_3(%arg0: i32, %arg1: i32) -> (i32, i32, i32) {
    %c0_i32 = arith.constant 0 : i32
    %c0_i32_0 = arith.constant 0 : i32
    %c0_i32_1 = arith.constant 0 : i32
    return %arg1, %c0_i32, %c0_i32_0 : i32, i32, i32
  }
  func.func @transform_4(%arg0: i32, %arg1: i32) -> (i32, i32, i32) {
    %c0_i32 = arith.constant 0 : i32
    %c0_i32_0 = arith.constant 0 : i32
    %c0_i32_1 = arith.constant 0 : i32
    return %arg1, %c0_i32, %c0_i32_0 : i32, i32, i32
  }
  func.func @transform_5(%arg0: i32, %arg1: i32) -> (i32, i32) {
    %c0_i32 = arith.constant 0 : i32
    %c0_i32_0 = arith.constant 0 : i32
    %c0_i32_1 = arith.constant 0 : i32
    return %c0_i32, %c0_i32_0 : i32, i32
  }
  func.func @transform_6(%arg0: i32, %arg1: i32) -> (i32, i32) {
    %c0_i32 = arith.constant 0 : i32
    %c0_i32_0 = arith.constant 0 : i32
    %c0_i32_1 = arith.constant 0 : i32
    return %c0_i32, %c0_i32_0 : i32, i32
  }
  func.func @transform_7(%arg0: i32, %arg1: i32) -> (i32, i32) {
    %c0_i32 = arith.constant 0 : i32
    %c0_i32_0 = arith.constant 0 : i32
    %c0_i32_1 = arith.constant 0 : i32
    return %c0_i32, %c0_i32_0 : i32, i32
  }
  func.func @transform_8(%arg0: i32, %arg1: i32) -> (i32, i32) {
    %c0_i32 = arith.constant 0 : i32
    %c0_i32_0 = arith.constant 0 : i32
    %c0_i32_1 = arith.constant 0 : i32
    return %c0_i32, %c0_i32_0 : i32, i32
  }
  func.func @transform_9(%arg0: i32, %arg1: i32) -> (i32, i32, i32, i32) {
    %c0_i32 = arith.constant 0 : i32
    %c0_i32_0 = arith.constant 0 : i32
    %c0_i32_1 = arith.constant 0 : i32
    return %arg1, %c0_i32, %c0_i32_0, %arg0 : i32, i32, i32, i32
  }
}

</mosaic_0001>

<bundles_post_ra>
// kernel: tpu_custom_call.1
= control target key start
LH: loop header
LB: loop body
LE: loop exit
PB: predicated region body
PF: predicated region fallthrough
CT: control target
= control target key end

     0   :  { %14 = vsyncpa [#allocation8], 0  ;;  %s2477_s0 = inlined_call_operand.vmem [shape: f32[16,128], index: 0, kind: input, shape index: {}]   ;;  %s2478_s1 = inlined_call_operand.vmem [shape: f32[32,32], index: 1, kind: input, shape index: {}]   ;;  %s2479_s2 = inlined_call_operand.vmem [shape: f32[32,32], index: 2, kind: input, shape index: {}]   ;;  %s2480_s3 = inlined_call_operand.vmem [shape: f32[4,32,16], index: 3, kind: input, shape index: {}]   ;;  %s2481_s4 = inlined_call_operand.vmem [shape: f32[4,16,32], index: 4, kind: input, shape index: {}]   ;;  %s2482_s5 = inlined_call_operand.vmem [shape: f32[20,1], index: 5, kind: input, shape index: {}]   ;;  %s2483_s6 = inlined_call_operand.vmem [shape: f32[20,1], index: 6, kind: input, shape index: {}]   ;;  %s2484_s7 = inlined_call_operand.vmem [shape: f32[4,20], index: 7, kind: input, shape index: {}]   ;;  %s2485_s8 = inlined_call_operand.vmem [shape: f32[4,1], index: 8, kind: input, shape index: {}]   ;;  %s2486_s9 = inlined_call_operand.hbm [shape: f32[4,2,16,128], index: 9, kind: output, shape index: {}]  }
   0x1   :  { %16 = vsyncpa [#allocation8 + $0x1], 0  ;;  %s2067_s30 = smov 0   ;;  %s2069_s10 = smov 0  }
   0x2   :  { %s2071_s11 = smov 0   ;;  %s2073_s12 = smov 0  }
   0x3   :  { %s2075_s13 = smov 0   ;;  %s2077_s14 = smov 0  }
   0x4 LB: > { %2490 = sst [smem:[#allocation14_spill]] %s2002_s13  ;;  %s1565_s15 = sadd.s32 4294967295, %s2006_s14   ;;  %s2006_s14 = sphi %s2077_s14, %s22_s14   ;;  %s2002_s13 = sphi %s2075_s13, %s2506_s13   ;;  %s1998_s12 = sphi %s2073_s12, %s2505_s12   ;;  %s1994_s11 = sphi %s2071_s11, %s2509_s11   ;;  %s1990_s10 = sphi %s2069_s10, %s2508_s10   ;;  %s1986_s30 = sphi %s2067_s30, %s2507_s30  }
   0x5   : > { %s1566_s16 = sadd.s32 4294967294, %s2006_s14   ;;  %s31_s17 = sadd.s32 1, %s2002_s13 }
   0x6   : > { %s205_s18 = sadd.s32 1, %s1994_s11  ;;  %p32_p0 = scmp.ge.s32.totalorder %s31_s17, 4 }
   0x7   : > { %p215_p1 = scmp.ne.s32.totalorder %s1994_s11, %s1990_s10  ;;  %p216_p2 = scmp.eq.s32.totalorder %s1565_s15, 3 }
   0x8   : > { %p221_p3 = scmp.ne.s32.totalorder %s1990_s10, %s1986_s30  ;;  %s2511_s17 = smov (%p32_p0, %s31_s17), 0 }
   0x9   : > { %2491 = sst [smem:[#allocation15_spill]] %s2511_s17  ;;  %p2107_p4 = por %p216_p2, %p215_p1 }
   0xa   : > { %p222_p5 = scmp.eq.s32.totalorder %s1566_s16, 3  ;;  %s200_s20 = ssub.s32 %s2002_s13, %s2511_s17 }
   0xb   : > { %p1570_p6 = scmp.ge.s32.totalorder %s2006_s14, 1  ;;  %p203_p7 = scmp.eq.s32.totalorder %s200_s20, 0 }
   0xc   : > { %p2114_p8 = por %p222_p5, %p221_p3  ;;  %p275_p9 = scmp.lt.s32.totalorder %s2006_s14, 5 }
   0xd   : > { %s2120_s22 = scalar_select %p203_p7, %s1994_s11, %s205_s18  }
   0xe   : > { %p276_p10 = pnand %p1570_p6, %p275_p9 }
   0xf   : > { %2494 = sst [smem:[#allocation16_spill]] %s2120_s22  ;;  %s2489_s23 = sand.u32 (!%p276_p10), 1, %s1990_s10  }
  0x10   : > { %279 = sbr.rel (%p276_p10) target bundleno = 1745 (0x6d1), region = 48  ;;  %p320_p11 = scmp.lt.s32.totalorder (!%p276_p10), %s1998_s12, 3 }
  0x11   : > { %s1571_s24 = sshll.u32 (!%p276_p10), %s2489_s23, 5  ;;  %p1576_p12 = scmp.ne.s32.totalorder (!%p276_p10), %s1998_s12, 0 }
  0x12   : > { %s2137_s17 = scalar_lea.vmem (!%p276_p10), [#allocation7], %s1571_s24 }
  0x17   : > { %s321_s25 = scalar_select %p320_p11, %s1998_s12, 3 }
  0x18   : > { %333 = sbr.rel (%p1576_p12) target bundleno = 427 (0x1ab), region = 52  ;;  %v366_v0 = vld [vmem:[%s2478_s1] sm:$0xff] (!%p1576_p12)  ;;  %v368_v1 = vld [vmem:[%s2478_s1 + $0x8] sm:$0xff] (!%p1576_p12)  ;;  %v370_v2 = vld [vmem:[%s2478_s1 + $0x10] sm:$0xff] (!%p1576_p12) }
  0x19   : > { %s1628_s26 = sshll.u32 %s321_s25, 5  ;;  %s1629_s27 = sshll.u32 %s321_s25, 4  ;;  %367 = vst [vmem:[#allocation4] sm:$0xff] (!%p1576_p12), %v366_v0  ;;  %369 = vst [vmem:[#allocation4 + $0x8] sm:$0xff] (!%p1576_p12), %v368_v1  ;;  %v372_v3 = vld [vmem:[%s2478_s1 + $0x18] sm:$0xff] (!%p1576_p12) }
  0x1a   : > { %s2130_s15 = scalar_lea.vmem %s2480_s3, %s1628_s26  ;;  %s2135_s20 = scalar_lea.vmem %s2481_s4, %s1629_s27  ;;  %371 = vst [vmem:[#allocation4 + $0x10] sm:$0xff] (!%p1576_p12), %v370_v2  ;;  %373 = vst [vmem:[#allocation4 + $0x18] sm:$0xff] (!%p1576_p12), %v372_v3 }
  0x1f   : > { %381 = vsyncadd [#allocation6], 512  ;;  %v415_v4 = vld [vmem:[%s2479_s2] sm:$0xff]  ;;  %v417_v5 = vld [vmem:[%s2479_s2 + $0x8] sm:$0xff]  ;;  %v2008_v10 = vmov 0  }
  0x20   : > { %416 = vst [vmem:[#allocation5] sm:$0xff] %v415_v4  ;;  %418 = vst [vmem:[#allocation5 + $0x8] sm:$0xff] %v417_v5  ;;  %v419_v6 = vld [vmem:[%s2479_s2 + $0x10] sm:$0xff]  ;;  %v421_v7 = vld [vmem:[%s2479_s2 + $0x18] sm:$0xff]  ;;  %1833 = vset.pattern.permute.xlu1 %v2008_v10  ;;  %1832 = vset.pattern.permute.xlu0 %v2008_v10 }
  0x21   : > { %420 = vst [vmem:[#allocation5 + $0x10] sm:$0xff] %v419_v6  ;;  %422 = vst [vmem:[#allocation5 + $0x18] sm:$0xff] %v421_v7  ;;  %v481_v8 = vld [vmem:[%s2483_s6] sm:$0xff]  ;;  %v432_v12 = vld [vmem:[%s2477_s0 + $0x8] sm:$0xff] }
  0x22   : > { %v460_v9 = vld [vmem:[%s2482_s5] sm:$0xff]  ;;  %486 = vperm.xlu1 %1833, %v481_v8   ;;  %v482_v13 = vld [vmem:[%s2483_s6 + $0x8] sm:$0xff]  ;;  %v434_v16 = vmul.f32 %v432_v12, %v432_v12  ;;  %598 = vst [vmem:[#allocation2 + $0x8] sm:$0xff] %v432_v12 }
  0x23   : > { %465 = vperm.xlu0 %1832, %v460_v9   ;;  %v431_v11 = vld [vmem:[%s2477_s0] sm:$0xff]  ;;  %v461_v14 = vld [vmem:[%s2482_s5 + $0x8] sm:$0xff] }
  0x24   : > { %v433_v15 = vmul.f32 %v431_v11, %v431_v11  ;;  %597 = vst [vmem:[#allocation2] sm:$0xff] %v431_v11 }
  0x25   : > { %430 = vsyncadd [#allocation6 + $0x1], 512  ;;  %v483_v18 = vld [vmem:[%s2483_s6 + $0x10] sm:$0xf]  ;;  %v506_v20 = vld [vmem:[%s2485_s8] sm:$0xf] }
  0x26   : > { %v435_v17 = vadd.f32 %v434_v16, %v433_v15  ;;  %491 = vperm.xlu1 %1833, %v482_v13   ;;  %v462_v19 = vld [vmem:[%s2482_s5 + $0x10] sm:$0xf]  ;;  %v2009_v21 = vmov 0.0|0.0   ;;  %vm2010_vm0 = vmmov 0   ;;  %v2011_v22 = vmov 0.0  }
  0x27   : > { %470 = vperm.xlu0 %1832, %v461_v14   ;;  %1714 = vmatprep.subr.bf16.mxu0 %v2009_v21  ;;  %vm516_vm3 = vcmask 1043456   ;;  %v505_v59 = vld [vmem:[%s2484_s7] sm:$0xf]  ;;  %vm512_vm4 = vcmask 162816  }
  0x28   : > { %1667 = vmatprep.mubr.msk.f32.mxu0 %vm2010_vm0, %v2011_v22  ;;  %v436_v23 = vrot.slane %v435_v17, 4 }
  0x2a   : > { %496 = vperm.xlu1 %1833, %v483_v18   ;;  %v437_v24 = vadd.f32 %v436_v23, %v435_v17 }
  0x2b   : > { %475 = vperm.xlu0 %1832, %v462_v19  }
  0x2c   : > { %v438_v25 = vrot.slane %v437_v24, 2 }
  0x2e   : > { %v439_v26 = vadd.f32 %v438_v25, %v437_v24 }
  0x2f   : > { %509 = vperm.xlu0 %1832, %v506_v20  }
  0x30   : > { %v440_v27 = vrot.slane %v439_v26, 1 }
  0x32   : > { %v441_v28 = vadd.f32 %v440_v27, %v439_v26 }
  0x34   : > { %v443_v29 = vmul.f32 0.0625, %v441_v28 }
  0x36   : > { %v444_v30 = vadd.f32 1.0, %v443_v29 }
  0x38   : > { %1834 = vrsqrt.f32 %v444_v30  ;;  %vm447_vm1 = vcmp.eq.f32.partialorder %v444_v30, inf  ;;  %v450_v33 = vand.u32 2147483648, %v444_v30  ;;  %vm449_vm2 = vcmp.eq.f32.partialorder %v444_v30, 0.0 }
  0x42   : > { %v1835_v31 = vpop.eup %1834 }
  0x43   : > { %v446_v32 = vmul.f32 %v1835_v31, %v444_v30 }
  0x45   : > { %v448_v34 = vsel %vm447_vm1, %v444_v30, %v446_v32 }
  0x46   : > { %v451_v35 = vsel %vm449_vm2, %v450_v33, %v448_v34 }
  0x47   : > { %v452_v36 = vadd.f32 1.0, %v451_v35 }
  0x49   : > { %1836 = vrcp.f32 %v452_v36 }
  0x53   : > { %v1837_v37 = vpop.eup %1836 }
  0x54   : > { %v454_v38 = vmul.f32 %v1837_v37, %v443_v29 }
  0x56   : > { %v456_v39 = vmul.f32 0.5, %v454_v38 }
  0x58   : > { %1838 = vlog2.f32 %v456_v39 }
  0x62   : > { %v1839_v40 = vpop.eup %1838 }
  0x63   : > { %v458_v41 = vmul.f32 0.6931472, %v1839_v40 }
  0x65   : > { %v459_v42 = vmul.f32 4.3429446, %v458_v41 }
  0xa1   : > { %v487_v43 = vpop.permute.xlu1 %486 }
  0xa2   : > { %v466_v44 = vpop.permute.xlu0 %465 }
  0xa3   : > { %v478_v45 = vmul.f32 %v466_v44, %v459_v42 }
  0xa5   : > { %v492_v46 = vpop.permute.xlu1 %491  ;;  %v499_v48 = vadd.f32 %v487_v43, %v478_v45 }
  0xa6   : > { %v471_v47 = vpop.permute.xlu0 %470 }
  0xa7   : > { %v479_v49 = vmul.f32 %v471_v47, %v459_v42  ;;  %v502_v52 = vmax.f32 %v499_v48, 0.0 }
  0xa9   : > { %v500_v50 = vadd.f32 %v492_v46, %v479_v49  ;;  %v497_v55 = vpop.permute.xlu1 %496 }
  0xaa   : > { %v476_v51 = vpop.permute.xlu0 %475 }
  0xab   : > { %v503_v53 = vmax.f32 %v500_v50, 0.0  ;;  %v480_v54 = vmul.f32 %v476_v51, %v459_v42 }
  0xad   : > { %v501_v56 = vadd.f32 %v497_v55, %v480_v54  ;;  %v1715_v57 = vpack.c.bf16 %v503_v53, %v502_v52 }
  0xae   : > { %v510_v60 = vpop.permute.xlu0 %509 }
  0xaf   : > { %1716 = vmatpush3.bf16.msra.mxu0 %v1715_v57  ;;  %v504_v58 = vmax.f32 %v501_v56, 0.0 }
  0xb0   : > { %1665 = vmatprep.subr.mxu0 %v2011_v22 }
  0xb3   : > { %1666 = vmatpush3.msk.msra.mxu0 %vm516_vm3, %v504_v58 }
  0xb4   : > { %1668 = vmatmul.mubr.msk.f32.vlgmr.msra.gmra.mrb[0].mxu0 %vm512_vm4, %v505_v59 }
 0x187   : > { %v586_v61 = vpop.f32.mrb[0].mxu0 }
 0x188   : > { %v587_v62 = vadd.f32 %v586_v61, %v510_v60  ;;  %v1669_v63 = vpop.f32.mrb[1].mxu0 }
 0x18a   : > { %v590_v0 = vsub.f32 0.0, %v587_v62 }
 0x18c   : > { %v591_v1 = vmul.f32 1.442695, %v590_v0 }
 0x18e   : > { %1840 = vpow2.f32 %v591_v1 }
 0x198   : > { %v1841_v2 = vpop.eup %1840 }
 0x199   : > { %v593_v3 = vadd.f32 1.0, %v1841_v2 }
 0x19b   : > { %1842 = vrcp.f32 %v593_v3 }
 0x1a5   : > { %v1843_v4 = vpop.eup %1842 }
 0x1a6   : > { %596 = vst [vmem:[#allocation3] sm:$0xf] %v1843_v4 }
 0x1a7   : > { %1976 = dma.done.wait [#allocation6], 512 }
 0x1a8   : > { %1977 = vsyncadd [#allocation6], 4294966784 }
 0x1a9   : > { %1978 = dma.done.wait [#allocation6 + $0x1], 512 }
 0x1aa   : > { %1979 = vsyncadd [#allocation6 + $0x1], 4294966784 }
 0x1ab PF: > { %v619_v7 = vlaneseq  ;;  %vm645_vm5 = vcmask 130048   ;;  %v641_v10 = vld [vmem:[%s2130_s15] sm:$0xff]  ;;  %v618_v14 = vld [vmem:[%s2477_s0 + $0x8] sm:$0xff]  ;;  %v643_v30 = vld [vmem:[%s2130_s15 + $0x10] sm:$0xff]  ;;  %v2012_v32 = vmov 0.0   ;;  %vm614_vm12 = vcmask 261120  }
 0x1ac   : > { %1674 = vmatprep.mubr.msk.f32.mxu0 %vm645_vm5, %v641_v10  ;;  %v617_v12 = vld [vmem:[%s2477_s0] sm:$0xff]  ;;  %v626_v16 = vld [vmem:[#allocation2 + $0x8] sm:$0xff]  ;;  %v644_v31 = vld [vmem:[%s2130_s15 + $0x18] sm:$0xff]  ;;  %877 = vmatprep.mubr.f32.mxu1 %v2012_v32  ;;  %v2013_v10 = vmov 1.0|1.0   ;;  %s2014_s16 = smov [#allocation7]  }
 0x1ad   : > { %v604_v5 = vld [vmem:[#allocation3] sm:$0x1]  ;;  %v606_v6 = vld [vmem:[#allocation3 + $0x2] sm:$0x1]  ;;  %v620_v9 = vshrl.u32 %v619_v7, 7  ;;  %v625_v15 = vld [vmem:[#allocation2] sm:$0xff] }
 0x1ae   : > { %v610_v8 = vsub.f32 1.0, %v604_v5  ;;  %v607_v11 = vmul.f32 1.5, %v606_v6  ;;  %v642_v29 = vld [vmem:[%s2130_s15 + $0x8] sm:$0xff]  ;;  %v2220_v33 = vld [vmem:[#allocation3 + $0x1] sm:$0x1]  ;;  %s1630_s15 = sshll.u32 %s1998_s12, 9 }
 0x1af   : > { %v2199_v13 = vsub.s32 0, %v620_v9  ;;  %s2422_s13 = scalar_lea.hbm %s2486_s9, %s1630_s15  ;;  %s2503_s12 = sand.u32 1, %s1990_s10  }
 0x1b0   : > { %s2431_s23 = scalar_lea.sflag [#allocation8], %s2503_s12  ;;  %s1928_s18 = sshll.u32 %s2014_s16, 4  ;;  %s1929_s18 = int_to_ptr.vmem [resolvable:$false] %s1928_s18 }
 0x1b1   : > { %v622_v17 = vrot.slane %v610_v8, %v2199_v13  ;;  %v630_v18 = vrot.slane %v604_v5, %v2199_v13  ;;  %v638_v19 = vrot.slane %v607_v11, %v2199_v13  ;;  %v2224_v34 = vrot.slane %v2220_v33, %v2199_v13  ;;  %s1930_s25 = scalar_lea.vmem %s1929_s18, 1024 }
 0x1b3   : > { %v623_v20 = vmul.f32 %v622_v17, %v617_v12  ;;  %v624_v21 = vmul.f32 %v622_v17, %v618_v14  ;;  %v631_v22 = vmul.f32 %v630_v18, %v625_v15  ;;  %v632_v23 = vmul.f32 %v630_v18, %v626_v16  ;;  %v2272_v12 = vld [vmem:[#allocation5] sm:$0xff]  ;;  %v2277_v14 = vld [vmem:[#allocation5 + $0x8] sm:$0xff]  ;;  %v2282_v15 = vld [vmem:[#allocation5 + $0x10] sm:$0xff] }
 0x1b4   : > { %v2287_v16 = vld [vmem:[#allocation5 + $0x18] sm:$0xff]  ;;  %v743_v17 = vld [vmem:[#allocation4] sm:$0xff] }
 0x1b5   : > { %v633_v24 = vadd.f32 %v631_v22, %v623_v20  ;;  %v634_v25 = vadd.f32 %v632_v23, %v624_v21 }
 0x1b7   : > { %v2207_v26 = vmul.f32 %v638_v19, %v633_v24  ;;  %v2209_v27 = vmul.f32 %v638_v19, %v634_v25 }
 0x1b9   : > { %v1717_v28 = vpack.c.bf16 %v2209_v27, %v2207_v26 }
 0x1bb   : > { %1718 = vmatprep.subr.bf16.mxu0 %v1717_v28 }
 0x1bc   : > { %1720 = vmatpush3.bf16.msra.mxu0 %v1717_v28 }
 0x1bf   : > { %1675 = vmatmul.mubr.msk.f32.vlgmr.msra.gmra.mrb[0].mxu0 %vm645_vm5, %v642_v29 }
 0x1c0   : > { %1677 = vmatprep.mubr.msk.f32.mxu0 %vm645_vm5, %v643_v30 }
 0x1c3   : > { %1678 = vmatmul.mubr.msk.f32.gmra.mrb[2].mxu0 %vm645_vm5, %v644_v31 }
 0x1c4   : > { %1688 = vmatprep.mubr.msk.f32.mxu0 %vm614_vm12, %v743_v17 }
 0x292   : > { %v2226_v35 = vpop.f32.mrb[0].mxu0 }
 0x293   : > { %v2230_v36 = vmul.f32 %v2226_v35, %v2224_v34  ;;  %v2232_v37 = vpop.f32.mrb[1].mxu0 }
 0x294   : > { %v2236_v38 = vmul.f32 %v2224_v34, %v2232_v37 }
 0x295   : > { %v774_v39 = vand.u32 2147483647, %v2230_v36  ;;  %vm762_vm6 = vcmp.lt.f32.partialorder %v2230_v36, 0.0 }
 0x296   : > { %v773_v40 = vand.u32 2147483647, %v2236_v38  ;;  %v2241_v41 = vpop.f32.mrb[2].mxu0  ;;  %vm761_vm7 = vcmp.lt.f32.partialorder %v2236_v38, 0.0 }
 0x297   : > { %v778_v42 = vmax.f32 %v774_v39, 6.1180464e-07  ;;  %v2246_v43 = vmul.f32 %v2241_v41, %v2224_v34  ;;  %v2248_v44 = vpop.f32.mrb[3].mxu0  ;;  %vm2250_vm8 = vmpackc.low %vm762_vm6, %vm761_vm7 }
 0x298   : > { %v777_v46 = vmax.f32 %v773_v40, 6.1180464e-07  ;;  %v2256_v47 = vmul.f32 %v2224_v34, %v2248_v44 }
 0x299   : > { %v782_v48 = vmin.f32 %v778_v42, 15.0  ;;  %v776_v49 = vand.u32 2147483647, %v2246_v43  ;;  %vm764_vm9 = vcmp.lt.f32.partialorder %v2246_v43, 0.0 }
 0x29a   : > { %v781_v50 = vmin.f32 %v777_v46, 15.0  ;;  %v775_v51 = vand.u32 2147483647, %v2256_v47  ;;  %vm763_vm10 = vcmp.lt.f32.partialorder %v2256_v47, 0.0 }
 0x29b   : > { %v786_v52 = vmul.f32 0.5, %v782_v48  ;;  %v780_v53 = vmax.f32 %v776_v49, 6.1180464e-07  ;;  %vm2262_vm11 = vmpackc.low %vm764_vm9, %vm763_vm10 }
 0x29c   : > { %v785_v55 = vmul.f32 0.5, %v781_v50  ;;  %v779_v56 = vmax.f32 %v775_v51, 6.1180464e-07 }
 0x29d   : > { %v784_v57 = vmin.f32 %v780_v53, 15.0  ;;  %1844 = vtanh.f32 %v786_v52 }
 0x29e   : > { %v783_v58 = vmin.f32 %v779_v56, 15.0  ;;  %1846 = vtanh.f32 %v785_v55 }
 0x29f   : > { %v788_v59 = vmul.f32 0.5, %v784_v57 }
 0x2a0   : > { %v787_v60 = vmul.f32 0.5, %v783_v58 }
 0x2a1   : > { %1848 = vtanh.f32 %v788_v59 }
 0x2a2   : > { %1850 = vtanh.f32 %v787_v60 }
 0x2a7   : > { %v1845_v61 = vpop.eup %1844 }
 0x2a8   : > { %v1847_v62 = vpop.eup %1846  ;;  %1852 = vlog2.f32 %v1845_v61 }
 0x2a9   : > { %1854 = vlog2.f32 %v1847_v62 }
 0x2ab   : > { %v1849_v63 = vpop.eup %1848 }
 0x2ac   : > { %v1851_v0 = vpop.eup %1850  ;;  %1856 = vlog2.f32 %v1849_v63 }
 0x2ad   : > { %1858 = vlog2.f32 %v1851_v0 }
 0x2b2   : > { %v1853_v1 = vpop.eup %1852 }
 0x2b3   : > { %v1855_v2 = vpop.eup %1854  ;;  %v796_v3 = vmul.f32 0.6931472, %v1853_v1 }
 0x2b4   : > { %v794_v4 = vmul.f32 0.6931472, %v1855_v2 }
 0x2b6   : > { %v1857_v5 = vpop.eup %1856  ;;  %v1721_v6 = vpack.c.bf16 %v796_v3, %v794_v4 }
 0x2b7   : > { %v1859_v7 = vpop.eup %1858  ;;  %v800_v8 = vmul.f32 0.6931472, %v1857_v5 }
 0x2b8   : > { %1722 = vmatprep.subr.bf16.mxu1 %v1721_v6  ;;  %v798_v9 = vmul.f32 0.6931472, %v1859_v7 }
 0x2b9   : > { %1724 = vmatpush1.bf16.msk.msra.mxu1 %vm2250_vm8, %v2013_v10 }
 0x2ba   : > { %v1725_v11 = vpack.c.bf16 %v800_v8, %v798_v9 }
 0x2bc   : > { %1726 = vmatprep.subr.bf16.mxu1 %v1725_v11 }
 0x2bd   : > { %1728 = vmatpush1.bf16.msk.msra.mxu1 %vm2262_vm11, %v2013_v10 }
 0x2c0   : > { %1591 = vmatmul.mubr.msk.f32.vlgmr.msra.gmra.mrb[0].mxu1 %vm614_vm12, %v2272_v12 }
 0x2c1   : > { %883 = vmatprep.mubr.f32.mxu1 %v2012_v32 }
 0x2c4   : > { %1592 = vmatmul.mubr.msk.f32.gmra.mrb[2].mxu1 %vm614_vm12, %v2277_v14 }
 0x2c5   : > { %889 = vmatprep.mubr.f32.mxu1 %v2012_v32 }
 0x2c8   : > { %1593 = vmatmul.mubr.msk.f32.gmra.mrb[4].mxu1 %vm614_vm12, %v2282_v15 }
 0x2c9   : > { %895 = vmatprep.mubr.f32.mxu1 %v2012_v32 }
 0x2cc   : > { %1594 = vmatmul.mubr.msk.f32.gmra.mrb[6].mxu1 %vm614_vm12, %v2287_v16 }
 0x2cd   : > { %1705 = vmatprep.mubr.msk.f32.mxu1 %vm614_vm12, %v743_v17 }
 0x393   : > { %v879_v18 = vpop.f32.mrb[0].mxu1 }
 0x394   : > { %v881_v19 = vpop.f32.mrb[1].mxu1  ;;  %v1753_v29 = vtrunc.f32 %v879_v18 }
 0x395   : > { %v922_v20 = vmul.f32 1.442695, %v881_v19 }
 0x396   : > { %v1754_v45 = vcvt.f32.s32 %v1753_v29 }
 0x397   : > { %1860 = vpow2.f32 %v922_v20  ;;  %v885_v21 = vpop.f32.mrb[2].mxu1  ;;  %v608_v20 = vld [vmem:[#allocation3 + $0x3] sm:$0x1] }
 0x398   : > { %v887_v22 = vpop.f32.mrb[3].mxu1  ;;  %v1755_v46 = vtrunc.f32 %v885_v21  ;;  %v906_v52 = vand.u32 1, %v1754_v45 }
 0x399   : > { %v924_v23 = vmul.f32 1.442695, %v887_v22 }
 0x39a   : > { %v1756_v53 = vcvt.f32.s32 %v1755_v46  ;;  %v910_v59 = vcvt.s32.f32 %v906_v52 }
 0x39b   : > { %1862 = vpow2.f32 %v924_v23  ;;  %v891_v24 = vpop.f32.mrb[4].mxu1 }
 0x39c   : > { %v893_v25 = vpop.f32.mrb[5].mxu1  ;;  %v1757_v56 = vtrunc.f32 %v891_v24  ;;  %v907_v60 = vand.u32 1, %v1756_v53  ;;  %v914_v3 = vmul.f32 2.0, %v910_v59 }
 0x39d   : > { %v926_v28 = vmul.f32 1.442695, %v893_v25 }
 0x39e   : > { %v1758_v61 = vcvt.f32.s32 %v1757_v56  ;;  %v911_v4 = vcvt.s32.f32 %v907_v60  ;;  %v918_v19 = vsub.f32 1.0, %v914_v3 }
 0x39f   : > { %1864 = vpow2.f32 %v926_v28  ;;  %v897_v30 = vpop.f32.mrb[6].mxu1 }
 0x3a0   : > { %v899_v31 = vpop.f32.mrb[7].mxu1  ;;  %v1759_v0 = vtrunc.f32 %v897_v30  ;;  %v908_v6 = vand.u32 1, %v1758_v61  ;;  %v915_v23 = vmul.f32 2.0, %v911_v4 }
 0x3a1   : > { %v1861_v39 = vpop.eup %1860  ;;  %v928_v40 = vmul.f32 1.442695, %v899_v31  ;;  %v609_v31 = vmul.f32 1.5, %v608_v20  ;;  %v612_v20 = vld [vmem:[%s2135_s20] sm:$0xff] }
 0x3a2   : > { %v930_v42 = vmul.f32 0.999999, %v1861_v39  ;;  %v1760_v7 = vcvt.f32.s32 %v1759_v0  ;;  %v912_v24 = vcvt.s32.f32 %v908_v6  ;;  %615 = vst.msk [vmem:[#allocation4 + $0x20] sm:$0xff] %vm614_vm12, %v612_v20 }
 0x3a3   : > { %1866 = vpow2.f32 %v928_v40 }
 0x3a4   : > { %v934_v48 = vadd.f32 1.0, %v930_v42  ;;  %v946_v49 = vsub.f32 1.0, %v930_v42  ;;  %v909_v25 = vand.u32 1, %v1760_v7  ;;  %v919_v42 = vsub.f32 1.0, %v915_v23 }
 0x3a5   : > { %v1863_v50 = vpop.eup %1862  ;;  %v916_v46 = vmul.f32 2.0, %v912_v24  ;;  %v611_v24 = vsub.f32 1.0, %v2220_v33 }
 0x3a6   : > { %1868 = vlog2.f32 %v934_v48  ;;  %v931_v51 = vmul.f32 0.999999, %v1863_v50  ;;  %v913_v48 = vcvt.s32.f32 %v909_v25 }
 0x3a7   : > { %1870 = vlog2.f32 %v946_v49  ;;  %v920_v56 = vsub.f32 1.0, %v916_v46  ;;  %v2343_v25 = vrot.slane %v611_v24, %v2199_v13 }
 0x3a8   : > { %v935_v54 = vadd.f32 1.0, %v931_v51  ;;  %v947_v55 = vsub.f32 1.0, %v931_v51 }
 0x3a9   : > { %v1865_v57 = vpop.eup %1864 }
 0x3aa   : > { %1872 = vlog2.f32 %v935_v54  ;;  %v932_v58 = vmul.f32 0.999999, %v1865_v57  ;;  %v2297_v54 = vrot.slane %v609_v31, %v2199_v13 }
 0x3ab   : > { %1874 = vlog2.f32 %v947_v55 }
 0x3ac   : > { %v936_v62 = vadd.f32 1.0, %v932_v58  ;;  %v948_v63 = vsub.f32 1.0, %v932_v58  ;;  %v917_v58 = vmul.f32 2.0, %v913_v48 }
 0x3ad   : > { %v1867_v1 = vpop.eup %1866 }
 0x3ae   : > { %1876 = vlog2.f32 %v936_v62  ;;  %v933_v2 = vmul.f32 0.999999, %v1867_v1 }
 0x3af   : > { %1878 = vlog2.f32 %v948_v63 }
 0x3b0   : > { %v1869_v5 = vpop.eup %1868  ;;  %v937_v8 = vadd.f32 1.0, %v933_v2  ;;  %v949_v9 = vsub.f32 1.0, %v933_v2  ;;  %v921_v2 = vsub.f32 1.0, %v917_v58 }
 0x3b1   : > { %v1871_v11 = vpop.eup %1870  ;;  %v939_v17 = vmul.f32 0.6931472, %v1869_v5 }
 0x3b2   : > { %v951_v18 = vmul.f32 0.6931472, %v1871_v11  ;;  %1880 = vlog2.f32 %v937_v8 }
 0x3b3   : > { %1882 = vlog2.f32 %v949_v9 }
 0x3b4   : > { %v1873_v21 = vpop.eup %1872  ;;  %v958_v22 = vsub.f32 %v939_v17, %v951_v18  ;;  %v2316_v17 = vld [vmem:[#allocation4 + $0x8] sm:$0xff]  ;;  %v2318_v18 = vld [vmem:[#allocation4 + $0x10] sm:$0xff] }
 0x3b5   : > { %v1875_v28 = vpop.eup %1874  ;;  %v941_v29 = vmul.f32 0.6931472, %v1873_v21  ;;  %v613_v21 = vld [vmem:[%s2135_s20 + $0x8] sm:$0xff]  ;;  %s1437_s20 = sshll.u32 %s2137_s17, 4  ;;  %s2424_s20 = int_to_ptr.vmem [resolvable:$true] %s1437_s20 }
 0x3b6   : > { %v953_v30 = vmul.f32 0.6931472, %v1875_v28  ;;  %v962_v39 = vmul.f32 %v958_v22, %v918_v19  ;;  %v2324_v19 = vld [vmem:[#allocation4 + $0x18] sm:$0xff]  ;;  %616 = vst.msk [vmem:[#allocation4 + $0x28] sm:$0xff] %vm614_vm12, %v613_v21  ;;  %v2332_v22 = vld [vmem:[#allocation4 + $0x20] sm:$0xff]  ;;  %s1924_s22 = scalar_lea.vmem %s2424_s20, 512  ;;  %p1931_p2 = scmp.lt.s32.totalorder %s2424_s20, %s1929_s18 }
 0x3b7   : > { %p1925_p13 = scmp.ne.s32.totalorder %s2424_s20, %s1924_s22  ;;  %p1932_p3 = scmp.lt.s32.totalorder %s1930_s25, %s1924_s22 }
 0x3b8   : > { %v1877_v40 = vpop.eup %1876  ;;  %v959_v45 = vsub.f32 %v941_v29, %v953_v30  ;;  %v2294_v53 = vmul.f32 %v962_v39, %v2224_v34  ;;  %v1100_v39 = vmul.f32 %v2343_v25, %v2230_v36 }
 0x3b9   : > { %v1879_v49 = vpop.eup %1878  ;;  %v943_v50 = vmul.f32 0.6931472, %v1877_v40  ;;  %p1926_p0 = pnand %p1925_p13, %p2107_p4  ;;  %p1933_p5 = por %p1932_p3, %p1931_p2 }
 0x3ba   : > { %v955_v51 = vmul.f32 0.6931472, %v1879_v49  ;;  %v963_v52 = vmul.f32 %v959_v45, %v919_v42  ;;  %v974_v63 = vmul.f32 %v2297_v54, %v2294_v53  ;;  %v1099_v42 = vmul.f32 %v2343_v25, %v2236_v38 }
 0x3bb   : > { %v1101_v38 = vmul.f32 %v2343_v25, %v2256_v47  ;;  %p1927_p1 = pneg %p1926_p0 }
 0x3bc   : > { %v1881_v55 = vpop.eup %1880  ;;  %v960_v57 = vsub.f32 %v943_v50, %v955_v51  ;;  %v2300_v59 = vmul.f32 %v963_v52, %v2224_v34 }
 0x3bd   : > { %v1883_v60 = vpop.eup %1882  ;;  %v945_v61 = vmul.f32 0.6931472, %v1881_v55  ;;  %v2336_v23 = vld [vmem:[#allocation4 + $0x28] sm:$0xff]  ;;  %p1934_p6 = pnand %p1933_p5, %p1927_p1 }
 0x3be   : > { %v957_v62 = vmul.f32 0.6931472, %v1883_v60  ;;  %v975_v0 = vmul.f32 %v2297_v54, %v2300_v59  ;;  %v964_v1 = vmul.f32 %v960_v57, %v920_v56 }
 0x3c0   : > { %v961_v3 = vsub.f32 %v945_v61, %v957_v62  ;;  %v1729_v4 = vpack.c.bf16 %v975_v0, %v974_v63  ;;  %v2307_v6 = vmul.f32 %v964_v1, %v2224_v34 }
 0x3c2   : > { %1730 = vmatprep.subr.bf16.mxu0 %v1729_v4  ;;  %v965_v5 = vmul.f32 %v961_v3, %v921_v2  ;;  %v976_v8 = vmul.f32 %v2297_v54, %v2307_v6 }
 0x3c3   : > { %1732 = vmatpush3.bf16.msra.mxu0 %v1729_v4 }
 0x3c4   : > { %v2310_v7 = vmul.f32 %v965_v5, %v2224_v34 }
 0x3c6   : > { %v977_v9 = vmul.f32 %v2297_v54, %v2310_v7 }
 0x3c8   : > { %v1733_v11 = vpack.c.bf16 %v977_v9, %v976_v8 }
 0x3ca   : > { %1734 = vmatprep.subr.bf16.mxu0 %v1733_v11 }
 0x3cb   : > { %1736 = vmatpush3.bf16.msra.mxu0 %v1733_v11 }
 0x3ce   : > { %1689 = vmatmul.mubr.msk.f32.vlgmr.msra.gmra.mrb[4].mxu0 %vm614_vm12, %v2316_v17 }
 0x3cf   : > { %1691 = vmatprep.mubr.msk.f32.mxu0 %vm614_vm12, %v2318_v18 }
 0x3d2   : > { %1692 = vmatmul.mubr.msk.f32.gmra.mrb[6].mxu0 %vm614_vm12, %v2324_v19 }
 0x3d3   : > { %1694 = vmatprep.mubr.msk.f32.mxu0 %vm614_vm12, %v2332_v22 }
 0x3d6   : > { %1695 = vmatmul.mubr.msk.f32.gmra.mrb[8].mxu0 %vm614_vm12, %v2336_v23 }
 0x3d7   : > { %1223 = vmatprep.mubr.f32.mxu0 %v2012_v32 }
 0x4a1   : > { %v1690_v28 = vpop.f32.mrb[4].mxu0 }
 0x4a2   : > { %v1104_v29 = vadd.f32 %v1690_v28, %v2226_v35  ;;  %v1062_v30 = vpop.f32.mrb[5].mxu0 }
 0x4a3   : > { %v1103_v31 = vadd.f32 %v1062_v30, %v2232_v37  ;;  %v1102_v37 = vmul.f32 %v2343_v25, %v2246_v43 }
 0x4a4   : > { %v1108_v40 = vmul.f32 %v1104_v29, %v2224_v34 }
 0x4a5   : > { %v1107_v45 = vmul.f32 %v1103_v31, %v2224_v34  ;;  %v1693_v33 = vpop.f32.mrb[6].mxu0 }
 0x4a6   : > { %v1112_v46 = vadd.f32 %v1108_v40, %v1100_v39  ;;  %v1106_v13 = vadd.f32 %v1693_v33, %v2241_v41  ;;  %v1072_v48 = vpop.f32.mrb[7].mxu0 }
 0x4a7   : > { %v1111_v49 = vadd.f32 %v1107_v45, %v1099_v42  ;;  %v1105_v35 = vadd.f32 %v1072_v48, %v2248_v44 }
 0x4a8   : > { %vm1120_vm13 = vcmp.lt.f32.partialorder %v1112_v46, 0.0  ;;  %v1132_v36 = vand.u32 2147483647, %v1112_v46  ;;  %v1110_v50 = vmul.f32 %v1106_v13, %v2224_v34 }
 0x4a9   : > { %vm1119_vm14 = vcmp.lt.f32.partialorder %v1111_v49, 0.0  ;;  %v1131_v51 = vand.u32 2147483647, %v1111_v49  ;;  %v1109_v52 = vmul.f32 %v1105_v35, %v2224_v34  ;;  %v1696_v33 = vpop.f32.mrb[8].mxu0 }
 0x4aa   : > { %v1136_v55 = vmax.f32 %v1132_v36, 6.1180464e-07  ;;  %v1114_v41 = vadd.f32 %v1110_v50, %v1102_v37  ;;  %vm2361_vm15 = vmpackc.low %vm1120_vm13, %vm1119_vm14  ;;  %v1082_v46 = vpop.f32.mrb[9].mxu0 }
 0x4ab   : > { %v1135_v44 = vmax.f32 %v1131_v51, 6.1180464e-07  ;;  %v1113_v57 = vadd.f32 %v1109_v52, %v1101_v38 }
 0x4ac   : > { %v1140_v43 = vmin.f32 %v1136_v55, 15.0  ;;  %vm1122_vm0 = vcmp.lt.f32.partialorder %v1114_v41, 0.0  ;;  %v1134_v58 = vand.u32 2147483647, %v1114_v41 }
 0x4ad   : > { %v1139_v60 = vmin.f32 %v1135_v44, 15.0  ;;  %vm1121_vm1 = vcmp.lt.f32.partialorder %v1113_v57, 0.0  ;;  %v1133_v61 = vand.u32 2147483647, %v1113_v57 }
 0x4ae   : > { %v1144_v62 = vmul.f32 0.5, %v1140_v43  ;;  %v1138_v47 = vmax.f32 %v1134_v58, 6.1180464e-07  ;;  %vm2365_vm2 = vmpackc.low %vm1122_vm0, %vm1121_vm1 }
 0x4af   : > { %v1143_v0 = vmul.f32 0.5, %v1139_v60  ;;  %v1137_v1 = vmax.f32 %v1133_v61, 6.1180464e-07 }
 0x4b0   : > { %1884 = vtanh.f32 %v1144_v62  ;;  %v1142_v2 = vmin.f32 %v1138_v47, 15.0 }
 0x4b1   : > { %1886 = vtanh.f32 %v1143_v0  ;;  %v1141_v3 = vmin.f32 %v1137_v1, 15.0 }
 0x4b2   : > { %v1146_v4 = vmul.f32 0.5, %v1142_v2 }
 0x4b3   : > { %v1145_v5 = vmul.f32 0.5, %v1141_v3 }
 0x4b4   : > { %1888 = vtanh.f32 %v1146_v4 }
 0x4b5   : > { %1890 = vtanh.f32 %v1145_v5 }
 0x4ba   : > { %v1885_v8 = vpop.eup %1884 }
 0x4bb   : > { %v1887_v9 = vpop.eup %1886  ;;  %1892 = vlog2.f32 %v1885_v8 }
 0x4bc   : > { %1894 = vlog2.f32 %v1887_v9 }
 0x4be   : > { %v1889_v11 = vpop.eup %1888 }
 0x4bf   : > { %v1891_v20 = vpop.eup %1890  ;;  %1896 = vlog2.f32 %v1889_v11 }
 0x4c0   : > { %1898 = vlog2.f32 %v1891_v20 }
 0x4c5   : > { %v1893_v21 = vpop.eup %1892 }
 0x4c6   : > { %v1895_v24 = vpop.eup %1894  ;;  %v1154_v28 = vmul.f32 0.6931472, %v1893_v21 }
 0x4c7   : > { %v1152_v29 = vmul.f32 0.6931472, %v1895_v24 }
 0x4c9   : > { %v1897_v30 = vpop.eup %1896  ;;  %v1737_v31 = vpack.c.bf16 %v1154_v28, %v1152_v29 }
 0x4ca   : > { %v1899_v39 = vpop.eup %1898  ;;  %v1158_v40 = vmul.f32 0.6931472, %v1897_v30 }
 0x4cb   : > { %1738 = vmatprep.subr.bf16.mxu0 %v1737_v31  ;;  %v1156_v42 = vmul.f32 0.6931472, %v1899_v39 }
 0x4cc   : > { %1740 = vmatpush1.bf16.msk.msra.mxu0 %vm2361_vm15, %v2013_v10 }
 0x4cd   : > { %v1741_v45 = vpack.c.bf16 %v1158_v40, %v1156_v42 }
 0x4cf   : > { %1742 = vmatprep.subr.bf16.mxu0 %v1741_v45 }
 0x4d0   : > { %1744 = vmatpush1.bf16.msk.msra.mxu0 %vm2365_vm2, %v2013_v10  ;;  %v1092_v10 = vadd.f32 %v1696_v33, %v2209_v27 }
 0x4d2   : > { %1094 = vst [vmem:[%s2137_s17 + $0x8] sm:$0xff] %v1092_v10 }
 0x4d3   : > { %1609 = vmatmul.mubr.msk.f32.vlgmr.msra.gmra.mrb[10].mxu0 %vm614_vm12, %v2272_v12  ;;  %v1091_v12 = vadd.f32 %v1082_v46, %v2207_v26 }
 0x4d4   : > { %1229 = vmatprep.mubr.f32.mxu0 %v2012_v32 }
 0x4d5   : > { %1093 = vst [vmem:[%s2137_s17] sm:$0xff] %v1091_v12 }
 0x4d7   : > { %1610 = vmatmul.mubr.msk.f32.gmra.mrb[12].mxu0 %vm614_vm12, %v2277_v14 }
 0x4d8   : > { %1235 = vmatprep.mubr.f32.mxu0 %v2012_v32 }
 0x4db   : > { %1611 = vmatmul.mubr.msk.f32.gmra.mrb[14].mxu0 %vm614_vm12, %v2282_v15 }
 0x4dc   : > { %1241 = vmatprep.mubr.f32.mxu0 %v2012_v32 }
 0x4df   : > { %1612 = vmatmul.mubr.msk.f32.gmra.mrb[16].mxu0 %vm614_vm12, %v2287_v16 }
 0x5a6   : > { %v1225_v13 = vpop.f32.mrb[10].mxu0 }
 0x5a7   : > { %v1227_v14 = vpop.f32.mrb[11].mxu0  ;;  %v1761_v16 = vtrunc.f32 %v1225_v13 }
 0x5a8   : > { %v1268_v48 = vmul.f32 1.442695, %v1227_v14 }
 0x5a9   : > { %v1762_v41 = vcvt.f32.s32 %v1761_v16 }
 0x5aa   : > { %1900 = vpow2.f32 %v1268_v48  ;;  %v1231_v49 = vpop.f32.mrb[12].mxu0 }
 0x5ab   : > { %v1233_v35 = vpop.f32.mrb[13].mxu0  ;;  %v1763_v57 = vtrunc.f32 %v1231_v49  ;;  %v1252_v60 = vand.u32 1, %v1762_v41 }
 0x5ac   : > { %v1270_v15 = vmul.f32 1.442695, %v1233_v35 }
 0x5ad   : > { %v1764_v61 = vcvt.f32.s32 %v1763_v57  ;;  %v1256_v2 = vcvt.s32.f32 %v1252_v60 }
 0x5ae   : > { %1902 = vpow2.f32 %v1270_v15  ;;  %v1237_v32 = vpop.f32.mrb[14].mxu0 }
 0x5af   : > { %v1239_v37 = vpop.f32.mrb[15].mxu0  ;;  %v1765_v63 = vtrunc.f32 %v1237_v32  ;;  %v1253_v4 = vand.u32 1, %v1764_v61  ;;  %v1260_v21 = vmul.f32 2.0, %v1256_v2  ;;  %v1116_v61 = vmul.f32 %v2343_v25, %v2300_v59 }
 0x5b0   : > { %v1272_v36 = vmul.f32 1.442695, %v1239_v37  ;;  %v1115_v37 = vmul.f32 %v2343_v25, %v2294_v53 }
 0x5b1   : > { %v1766_v5 = vcvt.f32.s32 %v1765_v63  ;;  %v1257_v29 = vcvt.s32.f32 %v1253_v4  ;;  %v1264_v46 = vsub.f32 1.0, %v1260_v21  ;;  %v1118_v21 = vmul.f32 %v2343_v25, %v2310_v7 }
 0x5b2   : > { %1904 = vpow2.f32 %v1272_v36  ;;  %v1243_v50 = vpop.f32.mrb[16].mxu0 }
 0x5b3   : > { %v1245_v38 = vpop.f32.mrb[17].mxu0  ;;  %v1767_v3 = vtrunc.f32 %v1243_v50  ;;  %v1254_v30 = vand.u32 1, %v1766_v5  ;;  %v1261_v13 = vmul.f32 2.0, %v1257_v29 }
 0x5b4   : > { %v1901_v51 = vpop.eup %1900  ;;  %v1274_v52 = vmul.f32 1.442695, %v1245_v38 }
 0x5b5   : > { %v1276_v55 = vmul.f32 0.999999, %v1901_v51  ;;  %v1768_v24 = vcvt.f32.s32 %v1767_v3  ;;  %v1258_v14 = vcvt.s32.f32 %v1254_v30  ;;  %v1265_v16 = vsub.f32 1.0, %v1261_v13 }
 0x5b6   : > { %1906 = vpow2.f32 %v1274_v52  ;;  %v1117_v3 = vmul.f32 %v2343_v25, %v2307_v6 }
 0x5b7   : > { %v1280_v56 = vadd.f32 1.0, %v1276_v55  ;;  %v1292_v44 = vsub.f32 1.0, %v1276_v55  ;;  %v1255_v33 = vand.u32 1, %v1768_v24  ;;  %v1262_v38 = vmul.f32 2.0, %v1258_v14 }
 0x5b8   : > { %v1903_v43 = vpop.eup %1902 }
 0x5b9   : > { %1908 = vlog2.f32 %v1280_v56  ;;  %v1277_v58 = vmul.f32 0.999999, %v1903_v43  ;;  %v1259_v32 = vcvt.s32.f32 %v1255_v33 }
 0x5ba   : > { %1910 = vlog2.f32 %v1292_v44 }
 0x5bb   : > { %v1281_v62 = vadd.f32 1.0, %v1277_v58  ;;  %v1293_v47 = vsub.f32 1.0, %v1277_v58  ;;  %v1263_v57 = vmul.f32 2.0, %v1259_v32  ;;  %v1266_v58 = vsub.f32 1.0, %v1262_v38 }
 0x5bc   : > { %v1905_v0 = vpop.eup %1904 }
 0x5bd   : > { %1912 = vlog2.f32 %v1281_v62  ;;  %v1278_v1 = vmul.f32 0.999999, %v1905_v0  ;;  %v1267_v2 = vsub.f32 1.0, %v1263_v57 }
 0x5be   : > { %1914 = vlog2.f32 %v1293_v47 }
 0x5bf   : > { %v1282_v8 = vadd.f32 1.0, %v1278_v1  ;;  %v1294_v9 = vsub.f32 1.0, %v1278_v1 }
 0x5c0   : > { %v1907_v11 = vpop.eup %1906 }
 0x5c1   : > { %1916 = vlog2.f32 %v1282_v8  ;;  %v1279_v20 = vmul.f32 0.999999, %v1907_v11 }
 0x5c2   : > { %1918 = vlog2.f32 %v1294_v9 }
 0x5c3   : > { %v1909_v28 = vpop.eup %1908  ;;  %v1283_v31 = vadd.f32 1.0, %v1279_v20  ;;  %v1295_v39 = vsub.f32 1.0, %v1279_v20 }
 0x5c4   : > { %v1911_v40 = vpop.eup %1910  ;;  %v1285_v42 = vmul.f32 0.6931472, %v1909_v28 }
 0x5c5   : > { %v1297_v45 = vmul.f32 0.6931472, %v1911_v40  ;;  %1920 = vlog2.f32 %v1283_v31 }
 0x5c6   : > { %1922 = vlog2.f32 %v1295_v39 }
 0x5c7   : > { %v1913_v10 = vpop.eup %1912  ;;  %v1304_v12 = vsub.f32 %v1285_v42, %v1297_v45 }
 0x5c8   : > { %v1915_v48 = vpop.eup %1914  ;;  %v1287_v49 = vmul.f32 0.6931472, %v1913_v10 }
 0x5c9   : > { %v1299_v35 = vmul.f32 0.6931472, %v1915_v48  ;;  %v1308_v15 = vmul.f32 %v1304_v12, %v1264_v46 }
 0x5cb   : > { %v1917_v36 = vpop.eup %1916  ;;  %v1305_v50 = vsub.f32 %v1287_v49, %v1299_v35  ;;  %v1312_v51 = vmul.f32 %v1308_v15, %v2224_v34 }
 0x5cc   : > { %v1919_v52 = vpop.eup %1918  ;;  %v1289_v55 = vmul.f32 0.6931472, %v1917_v36 }
 0x5cd   : > { %v1301_v41 = vmul.f32 0.6931472, %v1919_v52  ;;  %v1309_v56 = vmul.f32 %v1305_v50, %v1265_v16  ;;  %v1316_v44 = vadd.f32 %v1312_v51, %v1115_v37 }
 0x5cf   : > { %v1921_v43 = vpop.eup %1920  ;;  %v1306_v60 = vsub.f32 %v1289_v55, %v1301_v41  ;;  %v1313_v53 = vmul.f32 %v1309_v56, %v2224_v34  ;;  %v1320_v5 = vmul.f32 %v1316_v44, %v2297_v54 }
 0x5d0   : > { %v1923_v62 = vpop.eup %1922  ;;  %v1291_v47 = vmul.f32 0.6931472, %v1921_v43 }
 0x5d1   : > { %v1303_v63 = vmul.f32 0.6931472, %v1923_v62  ;;  %v1317_v0 = vadd.f32 %v1313_v53, %v1116_v61  ;;  %v1310_v1 = vmul.f32 %v1306_v60, %v1266_v58 }
 0x5d3   : > { %v1307_v4 = vsub.f32 %v1291_v47, %v1303_v63  ;;  %v1321_v8 = vmul.f32 %v1317_v0, %v2297_v54  ;;  %v1314_v9 = vmul.f32 %v1310_v1, %v2224_v34 }
 0x5d5   : > { %v1745_v11 = vpack.c.bf16 %v1321_v8, %v1320_v5  ;;  %v1311_v59 = vmul.f32 %v1307_v4, %v1267_v2  ;;  %v1318_v20 = vadd.f32 %v1314_v9, %v1117_v3 }
 0x5d7   : > { %1746 = vmatprep.subr.bf16.mxu1 %v1745_v11  ;;  %v1315_v24 = vmul.f32 %v1311_v59, %v2224_v34  ;;  %v1322_v6 = vmul.f32 %v1318_v20, %v2297_v54 }
 0x5d8   : > { %1748 = vmatpush3.bf16.msra.mxu1 %v1745_v11 }
 0x5d9   : > { %v1319_v28 = vadd.f32 %v1315_v24, %v1118_v21 }
 0x5db   : > { %v1323_v29 = vmul.f32 %v1319_v28, %v2297_v54 }
 0x5dd   : > { %v1749_v30 = vpack.c.bf16 %v1323_v29, %v1322_v6 }
 0x5df   : > { %1750 = vmatprep.subr.bf16.mxu1 %v1749_v30 }
 0x5e0   : > { %1752 = vmatpush3.bf16.msra.mxu1 %v1749_v30 }
 0x5e3   : > { %1706 = vmatmul.mubr.msk.f32.vlgmr.msra.gmra.mrb[8].mxu1 %vm614_vm12, %v2316_v17 }
 0x5e4   : > { %1708 = vmatprep.mubr.msk.f32.mxu1 %vm614_vm12, %v2318_v18 }
 0x5e7   : > { %1709 = vmatmul.mubr.msk.f32.gmra.mrb[10].mxu1 %vm614_vm12, %v2324_v19 }
 0x5e8   : > { %1711 = vmatprep.mubr.msk.f32.mxu1 %vm614_vm12, %v2332_v22 }
 0x5eb   : > { %1712 = vmatmul.mubr.msk.f32.gmra.mrb[12].mxu1 %vm614_vm12, %v2336_v23 }
 0x6b6   : > { %v1707_v34 = vpop.f32.mrb[8].mxu1 }
 0x6b7   : > { %v1390_v54 = vpop.f32.mrb[9].mxu1 }
 0x6ba   : > { %v1710_v7 = vpop.f32.mrb[10].mxu1 }
 0x6bb   : > { %v1398_v25 = vpop.f32.mrb[11].mxu1 }
 0x6be   : > { %v1713_v17 = vpop.f32.mrb[12].mxu1 }
 0x6bf   : > { %v1416_v18 = vadd.f32 %v1713_v17, %v2209_v27  ;;  %v1406_v31 = vpop.f32.mrb[13].mxu1 }
 0x6c0   : > { %v1415_v19 = vadd.f32 %v1406_v31, %v2207_v26 }
 0x6c1   : > { %1620 = vst [vmem:[%s2137_s17 + $0x18] sm:$0xff] %v1416_v18  ;;  %1421 = vst [vmem:[#allocation2 + $0x8] sm:$0xff] %v1416_v18 }
 0x6c2   : > { %1619 = vst [vmem:[%s2137_s17 + $0x10] sm:$0xff] %v1415_v19  ;;  %1420 = vst [vmem:[#allocation2] sm:$0xff] %v1415_v19 }
 0x6c3   : > { %1937 = shalt.err (!%p1934_p6)
}
 0x6c4   : > { %s1938_s17 = scalar_lea.hbm %s2422_s13, 512  ;;  %s1942_s24 = scalar_lea.hbm %s2486_s9, 2048 }
 0x6c5   : > { %p1939_p7 = scmp.ne.s32.totalorder %s2422_s13, %s1938_s17  ;;  %p1943_p11 = scmp.lt.u32.totalorder %s2422_s13, %s2486_s9 }
 0x6c6   : > { %p1944_p12 = scmp.lt.u32.totalorder %s1942_s24, %s1938_s17  ;;  %p1946_p0 = scmp.lt.u32.totalorder %s1938_s17, %s2422_s13 }
 0x6c7   : > { %p1940_p9 = pnand %p1939_p7, %p2107_p4 }
 0x6c8   : > { %p1945_p13 = por %p1944_p12, %p1943_p11 }
 0x6c9   : > { %p1941_p10 = pneg %p1940_p9 }
 0x6ca   : > { %p1947_p1 = por %p1946_p0, %p1945_p13 }
 0x6cc   : > { %p1948_p2 = pnand %p1947_p1, %p1941_p10 }
 0x6ce   : > { %1951 = shalt.err (!%p1948_p2)
}
 0x6cf   : > { %s2015_s29 = smov 128   ;;  %s2016_s12 = smov 8  }
 0x6d0   : > { %1769 = dma.vmem_to_hbm [thread:$0]  (%p2107_p4), %s2424_s20, 512, %s2422_s13, %s2431_s23, %s2015_s29, %s2015_s29, %s2016_s12  }
 0x6d1 PF: > { %p1775_p3 = scmp.ge.s32.totalorder %s2006_s14, 2  ;;  %s1452_s22 = sand.u32 1, %s1986_s30  }
 0x6d2   : > { %s1453_s16 = scalar_lea.sflag [#allocation8], %s1452_s22 }
 0x6d3   : > { %p1772_p5 = pnand %p1775_p3, %p2114_p8 }
 0x6d5   : > { %1981 = dma.done.wait (!%p1772_p5), %s1453_s16, 512  }
 0x6d6   : > { %1983 = vsyncadd (!%p1772_p5), %s1453_s16, 4294966784  ;;  %s22_s14 = sadd.s32 1, %s2006_s14   ;;  %s2504_s18 = sld [smem:[#allocation16_spill]] }
 0x6d7   : > { %p19_p6 = scmp.ge.s32.totalorder %s22_s14, 6   ;;  %s2505_s12 = sld [smem:[#allocation14_spill]] }
 0x6d8   : > { %s2506_s13 = sld [smem:[#allocation15_spill]]  ;;  %s2507_s30 = smov %s1990_s10 }
 0x6d9   : > { %s2508_s10 = smov %s1994_s11  ;;  %21 = sbr.rel (!%p19_p6) target bundleno = 4 (0x4), region = 180 }
 0x6dc   : > { %s2509_s11 = smov %s2504_s18 }
 0x6e0   :  { %1458 = vsyncpa [#allocation8], 1 }
 0x6e1   :  { %1460 = vsyncpa [#allocation8 + $0x1], 1 }
 0x6e2   :  { %1461 = vsyncmov [#allocation6] }
 0x6e5   :  { %s1462_s19 = vpop.sfrf %1461 }
 0x6e6   :  { %p1626_p4 = scmp.ne.s32.totalorder %s1462_s19, 0 }
 0x6e8   :  { %1466 = shalt.err (%p1626_p4)  }
 0x6e9   :  { %1468 = vsyncmov [#allocation6 + $0x1] }
 0x6ec   :  { %s1469_s21 = vpop.sfrf %1468 }
 0x6ed   :  { %p1627_p8 = scmp.ne.s32.totalorder %s1469_s21, 0 }
 0x6ef   :  { %1473 = shalt.err (%p1627_p8)  }

</bundles_post_ra>
